<compile_context>
chip_gen: v7x
topology: tpu7x:2x2x1
jax: 0.10.0
libtpu: 0.0.40
codegen_flags: <defaults>
</compile_context>

<pallas_src>
import functools

import jax
import jax.numpy as jnp
from jax.experimental import pallas as pl
from jax.experimental.pallas import tpu as pltpu


# -----------------------------------------------------------------------------
# Pallas kernel: multi-layer masked LSTM recurrence + final Linear projection.
# Rows of x/mask/seq/gin are ordered (t, local_batch) within one batch tile:
#   row = t * tb + j
# -----------------------------------------------------------------------------
def lstm_kernel(x_ref,        # (T*tb, H)   embedded tokens, time-major rows
                mask_ref,     # (T*tb, 1)   1.0 while t < length, else 0.0
                w_ih_ref,     # (L, H, 4H)  input->gates weights (pre-transposed)
                w_hh_ref,     # (L, H, 4H)  hidden->gates weights (pre-transposed)
                b_ref,        # (L, 1, 4H)  combined bias (b_ih + b_hh)
                wlin_h_ref,   # (H, 4H)     final linear weight, h part
                wlin_c_ref,   # (H, 4H)     final linear weight, c part
                blin_ref,     # (1, 4H)     final linear bias
                out_ref,      # (tb, 4H)    output tile
                seq_ref,      # (T*tb, H)   scratch: layer-to-layer sequence
                gin_ref):     # (T*tb, 4H)  scratch: hoisted input projection
    rows, H = x_ref.shape
    tb = out_ref.shape[0]
    T = rows // tb
    L = w_ih_ref.shape[0]

    h = jnp.zeros((tb, H), jnp.float32)
    c = jnp.zeros((tb, H), jnp.float32)

    for layer in range(L):                      # static: L is a small constant
        # ---- hoisted input projection: one big MXU matmul per layer --------
        # (no serial dependence on h; bias folded in here)
        src = x_ref[...] if layer == 0 else seq_ref[...]
        gin_ref[...] = (jnp.dot(src, w_ih_ref[layer],
                                preferred_element_type=jnp.float32)
                        + b_ref[layer])

        w_hh_t = w_hh_ref[layer]                # (H, 4H), reused every step
        write_seq = layer < L - 1               # top layer: skip writeback

        def step(t, carry, w_hh_t=w_hh_t, write_seq=write_seq):
            h, c = carry
            row = t * tb
            gates = gin_ref[pl.ds(row, tb)] + jnp.dot(
                h, w_hh_t, preferred_element_type=jnp.float32)   # (tb, 4H)
            # Full-lane-width activations (EUP); PyTorch gate order i, f, g, o.
            sig = jax.nn.sigmoid(gates)
            tnh = jnp.tanh(gates)
            i_g = sig[:, 0 * H:1 * H]
            f_g = sig[:, 1 * H:2 * H]
            g_g = tnh[:, 2 * H:3 * H]
            o_g = sig[:, 3 * H:4 * H]
            c_new = f_g * c + i_g * g_g
            h_new = o_g * jnp.tanh(c_new)
            m = mask_ref[pl.ds(row, tb)] > 0.5   # (tb, 1) bool
            h2 = jnp.where(m, h_new, h)
            c2 = jnp.where(m, c_new, c)
            if write_seq:
                seq_ref[pl.ds(row, tb)] = h2     # feed the next layer
            return (h2, c2)

        h, c = jax.lax.fori_loop(
            0, T, step,
            (jnp.zeros((tb, H), jnp.float32), jnp.zeros((tb, H), jnp.float32)),
            unroll=True)

    # state = cat([h, c]) @ W_lin + b  ==  h @ W_lin[:H] + c @ W_lin[H:] + b
    out_ref[...] = (jnp.dot(h, wlin_h_ref[...], preferred_element_type=jnp.float32)
                    + jnp.dot(c, wlin_c_ref[...], preferred_element_type=jnp.float32)
                    + blin_ref[...])


# -----------------------------------------------------------------------------
# Wrapper: embedding gather + mask/layout construction in JAX, recurrence in
# Pallas with a "parallel" grid over batch tiles.
# -----------------------------------------------------------------------------
@functools.partial(jax.jit, static_argnames=("batch_tile",))
def lstm_forward(tokens, lengths, params, *, batch_tile=None):
    emb = params["embedding"]                                # (V, H)
    tok = jnp.clip(tokens, 0)                                # torch.clamp(x, 0)
    x = jnp.take(emb, tok, axis=0).astype(jnp.float32)       # (B, T, H)
    B, T, H = x.shape
    L = params["w_ih_t"].shape[0]

    # Batch tile: either the whole batch or a multiple of 8 (sublane rule).
    tb = B if batch_tile is None else batch_tile
    assert B % tb == 0
    nt = B // tb

    # Rows ordered (tile, t, local_batch): row = g*T*tb + t*tb + j.
    x_rows = (x.reshape(nt, tb, T, H)
               .transpose(0, 2, 1, 3)
               .reshape(nt * T * tb, H))                     # (nt*T*tb, H)

    mask = (jnp.arange(T, dtype=jnp.int32)[None, :]
            < lengths[:, None].astype(jnp.int32)).astype(jnp.float32)  # (B, T)
    mask_rows = (mask.reshape(nt, tb, T)
                     .transpose(0, 2, 1)
                     .reshape(nt * T * tb, 1))               # (nt*T*tb, 1)

    w_lin_t = params["w_lin_t"]                              # (2H, 4H)
    w_lin_h = w_lin_t[:H]                                    # (H, 4H)
    w_lin_c = w_lin_t[H:]                                    # (H, 4H)

    grid_spec = pltpu.PrefetchScalarGridSpec(
        num_scalar_prefetch=0,
        grid=(nt,),
        in_specs=[
            pl.BlockSpec((T * tb, H), lambda g: (g, 0)),       # x rows
            pl.BlockSpec((T * tb, 1), lambda g: (g, 0)),       # mask rows
            pl.BlockSpec((L, H, 4 * H), lambda g: (0, 0, 0)),  # w_ih (shared)
            pl.BlockSpec((L, H, 4 * H), lambda g: (0, 0, 0)),  # w_hh (shared)
            pl.BlockSpec((L, 1, 4 * H), lambda g: (0, 0, 0)),  # bias (shared)
            pl.BlockSpec((H, 4 * H), lambda g: (0, 0)),        # w_lin_h
            pl.BlockSpec((H, 4 * H), lambda g: (0, 0)),        # w_lin_c
            pl.BlockSpec((1, 4 * H), lambda g: (0, 0)),        # b_lin
        ],
        out_specs=pl.BlockSpec((tb, 4 * H), lambda g: (g, 0)),
        scratch_shapes=[
            pltpu.VMEM((T * tb, H), jnp.float32),       # layer-to-layer seq
            pltpu.VMEM((T * tb, 4 * H), jnp.float32),   # hoisted input proj
        ],
    )

    out = pl.pallas_call(
        lstm_kernel,
        out_shape=jax.ShapeDtypeStruct((B, 4 * H), jnp.float32),
        grid_spec=grid_spec,
        compiler_params=pltpu.CompilerParams(
            dimension_semantics=("parallel",)),
    )(x_rows, mask_rows,
      params["w_ih_t"], params["w_hh_t"], params["b_lstm"],
      w_lin_h, w_lin_c, params["b_lin"])
    return out


# -----------------------------------------------------------------------------
# Deterministic parameter init (shapes match the PyTorch module).
# -----------------------------------------------------------------------------
def init_params(key, vocab_size, hidden_dim, num_layers):
    H, L, V = hidden_dim, num_layers, vocab_size
    k = 1.0 / jnp.sqrt(jnp.float32(H))
    keys = jax.random.split(key, 4 * L + 4)

    emb = jax.random.normal(keys[0], (V, H), jnp.float32)

    w_ih, w_hh, b = [], [], []
    for l in range(L):
        w_ih_l = jax.random.uniform(keys[1 + 4 * l], (4 * H, H), jnp.float32, -k, k)
        w_hh_l = jax.random.uniform(keys[2 + 4 * l], (4 * H, H), jnp.float32, -k, k)
        b_ih_l = jax.random.uniform(keys[3 + 4 * l], (4 * H,), jnp.float32, -k, k)
        b_hh_l = jax.random.uniform(keys[4 + 4 * l], (4 * H,), jnp.float32, -k, k)
        w_ih.append(w_ih_l.T)                    # (H, 4H)
        w_hh.append(w_hh_l.T)                    # (H, 4H)
        b.append((b_ih_l + b_hh_l)[None, :])     # (1, 4H)

    kl = 1.0 / jnp.sqrt(jnp.float32(2 * H))
    w_lin = jax.random.uniform(keys[-2], (4 * H, 2 * H), jnp.float32, -kl, kl)
    b_lin = jax.random.uniform(keys[-1], (4 * H,), jnp.float32, -kl, kl)

    return {
        "embedding": emb,
        "w_ih_t": jnp.stack(w_ih, axis=0),       # (L, H, 4H)
        "w_hh_t": jnp.stack(w_hh, axis=0),       # (L, H, 4H)
        "b_lstm": jnp.stack(b, axis=0),          # (L, 1, 4H)
        "w_lin_t": w_lin.T,                      # (2H, 4H)
        "b_lin": b_lin[None, :],                 # (1, 4H)
    }


# -----------------------------------------------------------------------------
# Pure-JAX reference (same masked-LSTM semantics) for a correctness check.
# -----------------------------------------------------------------------------
def reference_forward(tokens, lengths, params):
    emb = params["embedding"]
    x = jnp.take(emb, jnp.clip(tokens, 0), axis=0)           # (B, T, H)
    B, T, H = x.shape
    L = params["w_ih_t"].shape[0]
    mask = (jnp.arange(T)[None, :] < lengths[:, None]).astype(jnp.float32)

    seq = x
    h = c = jnp.zeros((B, H), jnp.float32)
    for l in range(L):
        h = c = jnp.zeros((B, H), jnp.float32)
        outs = []
        for t in range(T):
            gates = (seq[:, t, :] @ params["w_ih_t"][l]
                     + h @ params["w_hh_t"][l] + params["b_lstm"][l])
            i_g = jax.nn.sigmoid(gates[:, :H])
            f_g = jax.nn.sigmoid(gates[:, H:2 * H])
            g_g = jnp.tanh(gates[:, 2 * H:3 * H])
            o_g = jax.nn.sigmoid(gates[:, 3 * H:])
            c_new = f_g * c + i_g * g_g
            h_new = o_g * jnp.tanh(c_new)
            m = mask[:, t:t + 1]
            h = m * h_new + (1 - m) * h
            c = m * c_new + (1 - m) * c
            outs.append(h)
        seq = jnp.stack(outs, axis=1)
    state = jnp.concatenate([h, c], axis=-1)
    return state @ params["w_lin_t"] + params["b_lin"]


if __name__ == "__main__":
    VOCAB, HIDDEN, LAYERS = 50, 32, 2
    B, T = 2, 8

    key = jax.random.PRNGKey(0)
    kp, kt = jax.random.split(key)
    params = init_params(kp, VOCAB, HIDDEN, LAYERS)

    tokens = jax.random.randint(kt, (B, T), -2, VOCAB, dtype=jnp.int32)
    lengths = jnp.array([8, 5], dtype=jnp.int32)

    out = lstm_forward(tokens, lengths, params)
    out = jax.block_until_ready(out)

    ref = reference_forward(tokens, lengths, params)
    assert out.shape == (B, 4 * HIDDEN)
    assert jnp.allclose(out, ref, atol=1e-4, rtol=1e-4), "mismatch vs reference"

    print("KERNEL_OK")
</pallas_src>

<mosaic_0001>
module attributes {stable_mosaic.version = 11 : i64} {
  func.func @lstm_kernel(%arg0: i32, %arg1: memref<16x32xf32, #tpu.memory_space<vmem>>, %arg2: memref<16x1xf32, #tpu.memory_space<vmem>>, %arg3: memref<2x32x128xf32, #tpu.memory_space<vmem>>, %arg4: memref<2x32x128xf32, #tpu.memory_space<vmem>>, %arg5: memref<2x1x128xf32, #tpu.memory_space<vmem>>, %arg6: memref<32x128xf32, #tpu.memory_space<vmem>>, %arg7: memref<32x128xf32, #tpu.memory_space<vmem>>, %arg8: memref<1x128xf32, #tpu.memory_space<vmem>>, %arg9: memref<2x128xf32, #tpu.memory_space<vmem>>, %arg10: memref<16x32xf32, #tpu.memory_space<vmem>>, %arg11: memref<16x128xf32, #tpu.memory_space<vmem>>) attributes {dimension_semantics = [#tpu.dimension_semantics<parallel>], iteration_bounds = array<i64: 1>, scalar_prefetch = 0 : i64, scratch_operands = 2 : i64, tpu.core_type = #tpu.core_type<tc>, window_params = [{transform_indices = @transform_0, window_bounds = array<i64: 16, 32>}, {transform_indices = @transform_1, window_bounds = array<i64: 16, 1>}, {pipeline_mode = #tpu.pipeline_mode<synchronous>, transform_indices = @transform_2, window_bounds = array<i64: 2, 32, 128>}, {pipeline_mode = #tpu.pipeline_mode<synchronous>, transform_indices = @transform_3, window_bounds = array<i64: 2, 32, 128>}, {pipeline_mode = #tpu.pipeline_mode<synchronous>, transform_indices = @transform_4, window_bounds = array<i64: 2, 1, 128>}, {pipeline_mode = #tpu.pipeline_mode<synchronous>, transform_indices = @transform_5, window_bounds = array<i64: 32, 128>}, {pipeline_mode = #tpu.pipeline_mode<synchronous>, transform_indices = @transform_6, window_bounds = array<i64: 32, 128>}, {pipeline_mode = #tpu.pipeline_mode<synchronous>, transform_indices = @transform_7, window_bounds = array<i64: 1, 128>}, {transform_indices = @transform_8, window_bounds = array<i64: 2, 128>}]} {
    %c0 = arith.constant 0 : index
    %c0_0 = arith.constant 0 : index
    %0 = vector.load %arg1[%c0, %c0_0] : memref<16x32xf32, #tpu.memory_space<vmem>>, vector<16x32xf32>
    %c0_1 = arith.constant 0 : index
    %c0_2 = arith.constant 0 : index
    %c0_3 = arith.constant 0 : index
    %1 = vector.load %arg3[%c0_1, %c0_2, %c0_3] : memref<2x32x128xf32, #tpu.memory_space<vmem>>, vector<1x32x128xf32>
    %2 = vector.shape_cast %1 : vector<1x32x128xf32> to vector<32x128xf32>
    %cst = arith.constant dense<0.000000e+00> : vector<16x128xf32>
    %3 = tpu.matmul %0, %2, %cst {dimension_numbers = #tpu.dot_dimension_numbers<[1], [0], [0], [1], [0, 0, 1, 1], [], []>} : vector<16x32xf32>, vector<32x128xf32>, vector<16x128xf32> -> vector<16x128xf32>
    %c0_4 = arith.constant 0 : index
    %c0_5 = arith.constant 0 : index
    %c0_6 = arith.constant 0 : index
    %4 = vector.load %arg5[%c0_4, %c0_5, %c0_6] : memref<2x1x128xf32, #tpu.memory_space<vmem>>, vector<1x1x128xf32>
    %5 = vector.shape_cast %4 : vector<1x1x128xf32> to vector<1x128xf32>
    %6 = vector.broadcast %5 : vector<1x128xf32> to vector<16x128xf32>
    %7 = arith.addf %3, %6 : vector<16x128xf32>
    %c0_7 = arith.constant 0 : index
    %c0_8 = arith.constant 0 : index
    %8 = vector.load %arg11[%c0_7, %c0_8] : memref<16x128xf32, #tpu.memory_space<vmem>>, vector<16x128xf32>
    tpu.vector_store %arg11[%c0_7, %c0_8], %7 {strides = array<i32>} : memref<16x128xf32, #tpu.memory_space<vmem>>, vector<16x128xf32>,
    %c0_9 = arith.constant 0 : index
    %c0_10 = arith.constant 0 : index
    %c0_11 = arith.constant 0 : index
    %9 = vector.load %arg4[%c0_9, %c0_10, %c0_11] : memref<2x32x128xf32, #tpu.memory_space<vmem>>, vector<1x32x128xf32>
    %10 = vector.shape_cast %9 : vector<1x32x128xf32> to vector<32x128xf32>
    %cst_12 = arith.constant 0.000000e+00 : f32
    %11 = vector.broadcast %cst_12 : f32 to vector<2x32xf32>
    %cst_13 = arith.constant 0.000000e+00 : f32
    %12 = vector.broadcast %cst_13 : f32 to vector<2x32xf32>
    %c0_i32 = arith.constant 0 : i32
    %c2_i32 = arith.constant 2 : i32
    %13 = arith.muli %c0_i32, %c2_i32 : i32
    %14 = arith.index_cast %13 : i32 to index
    %c0_14 = arith.constant 0 : index
    %15 = vector.load %arg11[%14, %c0_14] : memref<16x128xf32, #tpu.memory_space<vmem>>, vector<2x128xf32>
    %cst_15 = arith.constant dense<0.000000e+00> : vector<2x128xf32>
    %16 = tpu.matmul %11, %10, %cst_15 {dimension_numbers = #tpu.dot_dimension_numbers<[1], [0], [0], [1], [0, 0, 1, 1], [], []>} : vector<2x32xf32>, vector<32x128xf32>, vector<2x128xf32> -> vector<2x128xf32>
    %17 = arith.addf %15, %16 : vector<2x128xf32>
    %18 = arith.negf %17 : vector<2x128xf32>
    %19 = math.exp %18 : vector<2x128xf32>
    %cst_16 = arith.constant 1.000000e+00 : f32
    %20 = vector.broadcast %cst_16 : f32 to vector<2x128xf32>
    %21 = arith.addf %20, %19 : vector<2x128xf32>
    %22 = arith.divf %20, %21 : vector<2x128xf32>
    %23 = math.tanh %17 : vector<2x128xf32>
    %24 = vector.extract_strided_slice %22 {offsets = [0, 0], sizes = [2, 32], strides = [1, 1]} : vector<2x128xf32> to vector<2x32xf32>
    %25 = vector.extract_strided_slice %22 {offsets = [0, 32], sizes = [2, 32], strides = [1, 1]} : vector<2x128xf32> to vector<2x32xf32>
    %26 = vector.extract_strided_slice %23 {offsets = [0, 64], sizes = [2, 32], strides = [1, 1]} : vector<2x128xf32> to vector<2x32xf32>
    %27 = vector.extract_strided_slice %22 {offsets = [0, 96], sizes = [2, 32], strides = [1, 1]} : vector<2x128xf32> to vector<2x32xf32>
    %28 = arith.mulf %25, %12 : vector<2x32xf32>
    %29 = arith.mulf %24, %26 : vector<2x32xf32>
    %30 = arith.addf %28, %29 : vector<2x32xf32>
    %31 = math.tanh %30 : vector<2x32xf32>
    %32 = arith.mulf %27, %31 : vector<2x32xf32>
    %33 = arith.index_cast %13 : i32 to index
    %c0_17 = arith.constant 0 : index
    %34 = vector.load %arg2[%33, %c0_17] : memref<16x1xf32, #tpu.memory_space<vmem>>, vector<2x1xf32>
    %cst_18 = arith.constant 5.000000e-01 : f32
    %35 = vector.broadcast %cst_18 : f32 to vector<2x1xf32>
    %36 = arith.cmpf ogt, %34, %35 : vector<2x1xf32>
    %37 = vector.shape_cast %36 : vector<2x1xi1> to vector<2x1xi1>
    %38 = vector.broadcast %37 : vector<2x1xi1> to vector<2x32xi1>
    %39 = arith.select %38, %32, %11 : vector<2x32xi1>, vector<2x32xf32>
    %40 = vector.shape_cast %36 : vector<2x1xi1> to vector<2x1xi1>
    %41 = vector.broadcast %40 : vector<2x1xi1> to vector<2x32xi1>
    %42 = arith.select %41, %30, %12 : vector<2x32xi1>, vector<2x32xf32>
    %43 = arith.index_cast %13 : i32 to index
    %c0_19 = arith.constant 0 : index
    %44 = vector.load %arg10[%43, %c0_19] : memref<16x32xf32, #tpu.memory_space<vmem>>, vector<2x32xf32>
    tpu.vector_store %arg10[%43, %c0_19], %39 {strides = array<i32>} : memref<16x32xf32, #tpu.memory_space<vmem>>, vector<2x32xf32>,
    %c1_i32 = arith.constant 1 : i32
    %c2_i32_20 = arith.constant 2 : i32
    %45 = arith.muli %c1_i32, %c2_i32_20 : i32
    %46 = arith.index_cast %45 : i32 to index
    %c0_21 = arith.constant 0 : index
    %47 = vector.load %arg11[%46, %c0_21] : memref<16x128xf32, #tpu.memory_space<vmem>>, vector<2x128xf32>
    %cst_22 = arith.constant dense<0.000000e+00> : vector<2x128xf32>
    %48 = tpu.matmul %39, %10, %cst_22 {dimension_numbers = #tpu.dot_dimension_numbers<[1], [0], [0], [1], [0, 0, 1, 1], [], []>} : vector<2x32xf32>, vector<32x128xf32>, vector<2x128xf32> -> vector<2x128xf32>
    %49 = arith.addf %47, %48 : vector<2x128xf32>
    %50 = arith.negf %49 : vector<2x128xf32>
    %51 = math.exp %50 : vector<2x128xf32>
    %cst_23 = arith.constant 1.000000e+00 : f32
    %52 = vector.broadcast %cst_23 : f32 to vector<2x128xf32>
    %53 = arith.addf %52, %51 : vector<2x128xf32>
    %54 = arith.divf %52, %53 : vector<2x128xf32>
    %55 = math.tanh %49 : vector<2x128xf32>
    %56 = vector.extract_strided_slice %54 {offsets = [0, 0], sizes = [2, 32], strides = [1, 1]} : vector<2x128xf32> to vector<2x32xf32>
    %57 = vector.extract_strided_slice %54 {offsets = [0, 32], sizes = [2, 32], strides = [1, 1]} : vector<2x128xf32> to vector<2x32xf32>
    %58 = vector.extract_strided_slice %55 {offsets = [0, 64], sizes = [2, 32], strides = [1, 1]} : vector<2x128xf32> to vector<2x32xf32>
    %59 = vector.extract_strided_slice %54 {offsets = [0, 96], sizes = [2, 32], strides = [1, 1]} : vector<2x128xf32> to vector<2x32xf32>
    %60 = arith.mulf %57, %42 : vector<2x32xf32>
    %61 = arith.mulf %56, %58 : vector<2x32xf32>
    %62 = arith.addf %60, %61 : vector<2x32xf32>
    %63 = math.tanh %62 : vector<2x32xf32>
    %64 = arith.mulf %59, %63 : vector<2x32xf32>
    %65 = arith.index_cast %45 : i32 to index
    %c0_24 = arith.constant 0 : index
    %66 = vector.load %arg2[%65, %c0_24] : memref<16x1xf32, #tpu.memory_space<vmem>>, vector<2x1xf32>
    %cst_25 = arith.constant 5.000000e-01 : f32
    %67 = vector.broadcast %cst_25 : f32 to vector<2x1xf32>
    %68 = arith.cmpf ogt, %66, %67 : vector<2x1xf32>
    %69 = vector.shape_cast %68 : vector<2x1xi1> to vector<2x1xi1>
    %70 = vector.broadcast %69 : vector<2x1xi1> to vector<2x32xi1>
    %71 = arith.select %70, %64, %39 : vector<2x32xi1>, vector<2x32xf32>
    %72 = vector.shape_cast %68 : vector<2x1xi1> to vector<2x1xi1>
    %73 = vector.broadcast %72 : vector<2x1xi1> to vector<2x32xi1>
    %74 = arith.select %73, %62, %42 : vector<2x32xi1>, vector<2x32xf32>
    %75 = arith.index_cast %45 : i32 to index
    %c0_26 = arith.constant 0 : index
    %76 = vector.load %arg10[%75, %c0_26] : memref<16x32xf32, #tpu.memory_space<vmem>>, vector<2x32xf32>
    tpu.vector_store %arg10[%75, %c0_26], %71 {strides = array<i32>} : memref<16x32xf32, #tpu.memory_space<vmem>>, vector<2x32xf32>,
    %c2_i32_27 = arith.constant 2 : i32
    %c2_i32_28 = arith.constant 2 : i32
    %77 = arith.muli %c2_i32_27, %c2_i32_28 : i32
    %78 = arith.index_cast %77 : i32 to index
    %c0_29 = arith.constant 0 : index
    %79 = vector.load %arg11[%78, %c0_29] : memref<16x128xf32, #tpu.memory_space<vmem>>, vector<2x128xf32>
    %cst_30 = arith.constant dense<0.000000e+00> : vector<2x128xf32>
    %80 = tpu.matmul %71, %10, %cst_30 {dimension_numbers = #tpu.dot_dimension_numbers<[1], [0], [0], [1], [0, 0, 1, 1], [], []>} : vector<2x32xf32>, vector<32x128xf32>, vector<2x128xf32> -> vector<2x128xf32>
    %81 = arith.addf %79, %80 : vector<2x128xf32>
    %82 = arith.negf %81 : vector<2x128xf32>
    %83 = math.exp %82 : vector<2x128xf32>
    %cst_31 = arith.constant 1.000000e+00 : f32
    %84 = vector.broadcast %cst_31 : f32 to vector<2x128xf32>
    %85 = arith.addf %84, %83 : vector<2x128xf32>
    %86 = arith.divf %84, %85 : vector<2x128xf32>
    %87 = math.tanh %81 : vector<2x128xf32>
    %88 = vector.extract_strided_slice %86 {offsets = [0, 0], sizes = [2, 32], strides = [1, 1]} : vector<2x128xf32> to vector<2x32xf32>
    %89 = vector.extract_strided_slice %86 {offsets = [0, 32], sizes = [2, 32], strides = [1, 1]} : vector<2x128xf32> to vector<2x32xf32>
    %90 = vector.extract_strided_slice %87 {offsets = [0, 64], sizes = [2, 32], strides = [1, 1]} : vector<2x128xf32> to vector<2x32xf32>
    %91 = vector.extract_strided_slice %86 {offsets = [0, 96], sizes = [2, 32], strides = [1, 1]} : vector<2x128xf32> to vector<2x32xf32>
    %92 = arith.mulf %89, %74 : vector<2x32xf32>
    %93 = arith.mulf %88, %90 : vector<2x32xf32>
    %94 = arith.addf %92, %93 : vector<2x32xf32>
    %95 = math.tanh %94 : vector<2x32xf32>
    %96 = arith.mulf %91, %95 : vector<2x32xf32>
    %97 = arith.index_cast %77 : i32 to index
    %c0_32 = arith.constant 0 : index
    %98 = vector.load %arg2[%97, %c0_32] : memref<16x1xf32, #tpu.memory_space<vmem>>, vector<2x1xf32>
    %cst_33 = arith.constant 5.000000e-01 : f32
    %99 = vector.broadcast %cst_33 : f32 to vector<2x1xf32>
    %100 = arith.cmpf ogt, %98, %99 : vector<2x1xf32>
    %101 = vector.shape_cast %100 : vector<2x1xi1> to vector<2x1xi1>
    %102 = vector.broadcast %101 : vector<2x1xi1> to vector<2x32xi1>
    %103 = arith.select %102, %96, %71 : vector<2x32xi1>, vector<2x32xf32>
    %104 = vector.shape_cast %100 : vector<2x1xi1> to vector<2x1xi1>
    %105 = vector.broadcast %104 : vector<2x1xi1> to vector<2x32xi1>
    %106 = arith.select %105, %94, %74 : vector<2x32xi1>, vector<2x32xf32>
    %107 = arith.index_cast %77 : i32 to index
    %c0_34 = arith.constant 0 : index
    %108 = vector.load %arg10[%107, %c0_34] : memref<16x32xf32, #tpu.memory_space<vmem>>, vector<2x32xf32>
    tpu.vector_store %arg10[%107, %c0_34], %103 {strides = array<i32>} : memref<16x32xf32, #tpu.memory_space<vmem>>, vector<2x32xf32>,
    %c3_i32 = arith.constant 3 : i32
    %c2_i32_35 = arith.constant 2 : i32
    %109 = arith.muli %c3_i32, %c2_i32_35 : i32
    %110 = arith.index_cast %109 : i32 to index
    %c0_36 = arith.constant 0 : index
    %111 = vector.load %arg11[%110, %c0_36] : memref<16x128xf32, #tpu.memory_space<vmem>>, vector<2x128xf32>
    %cst_37 = arith.constant dense<0.000000e+00> : vector<2x128xf32>
    %112 = tpu.matmul %103, %10, %cst_37 {dimension_numbers = #tpu.dot_dimension_numbers<[1], [0], [0], [1], [0, 0, 1, 1], [], []>} : vector<2x32xf32>, vector<32x128xf32>, vector<2x128xf32> -> vector<2x128xf32>
    %113 = arith.addf %111, %112 : vector<2x128xf32>
    %114 = arith.negf %113 : vector<2x128xf32>
    %115 = math.exp %114 : vector<2x128xf32>
    %cst_38 = arith.constant 1.000000e+00 : f32
    %116 = vector.broadcast %cst_38 : f32 to vector<2x128xf32>
    %117 = arith.addf %116, %115 : vector<2x128xf32>
    %118 = arith.divf %116, %117 : vector<2x128xf32>
    %119 = math.tanh %113 : vector<2x128xf32>
    %120 = vector.extract_strided_slice %118 {offsets = [0, 0], sizes = [2, 32], strides = [1, 1]} : vector<2x128xf32> to vector<2x32xf32>
    %121 = vector.extract_strided_slice %118 {offsets = [0, 32], sizes = [2, 32], strides = [1, 1]} : vector<2x128xf32> to vector<2x32xf32>
    %122 = vector.extract_strided_slice %119 {offsets = [0, 64], sizes = [2, 32], strides = [1, 1]} : vector<2x128xf32> to vector<2x32xf32>
    %123 = vector.extract_strided_slice %118 {offsets = [0, 96], sizes = [2, 32], strides = [1, 1]} : vector<2x128xf32> to vector<2x32xf32>
    %124 = arith.mulf %121, %106 : vector<2x32xf32>
    %125 = arith.mulf %120, %122 : vector<2x32xf32>
    %126 = arith.addf %124, %125 : vector<2x32xf32>
    %127 = math.tanh %126 : vector<2x32xf32>
    %128 = arith.mulf %123, %127 : vector<2x32xf32>
    %129 = arith.index_cast %109 : i32 to index
    %c0_39 = arith.constant 0 : index
    %130 = vector.load %arg2[%129, %c0_39] : memref<16x1xf32, #tpu.memory_space<vmem>>, vector<2x1xf32>
    %cst_40 = arith.constant 5.000000e-01 : f32
    %131 = vector.broadcast %cst_40 : f32 to vector<2x1xf32>
    %132 = arith.cmpf ogt, %130, %131 : vector<2x1xf32>
    %133 = vector.shape_cast %132 : vector<2x1xi1> to vector<2x1xi1>
    %134 = vector.broadcast %133 : vector<2x1xi1> to vector<2x32xi1>
    %135 = arith.select %134, %128, %103 : vector<2x32xi1>, vector<2x32xf32>
    %136 = vector.shape_cast %132 : vector<2x1xi1> to vector<2x1xi1>
    %137 = vector.broadcast %136 : vector<2x1xi1> to vector<2x32xi1>
    %138 = arith.select %137, %126, %106 : vector<2x32xi1>, vector<2x32xf32>
    %139 = arith.index_cast %109 : i32 to index
    %c0_41 = arith.constant 0 : index
    %140 = vector.load %arg10[%139, %c0_41] : memref<16x32xf32, #tpu.memory_space<vmem>>, vector<2x32xf32>
    tpu.vector_store %arg10[%139, %c0_41], %135 {strides = array<i32>} : memref<16x32xf32, #tpu.memory_space<vmem>>, vector<2x32xf32>,
    %c4_i32 = arith.constant 4 : i32
    %c2_i32_42 = arith.constant 2 : i32
    %141 = arith.muli %c4_i32, %c2_i32_42 : i32
    %142 = arith.index_cast %141 : i32 to index
    %c0_43 = arith.constant 0 : index
    %143 = vector.load %arg11[%142, %c0_43] : memref<16x128xf32, #tpu.memory_space<vmem>>, vector<2x128xf32>
    %cst_44 = arith.constant dense<0.000000e+00> : vector<2x128xf32>
    %144 = tpu.matmul %135, %10, %cst_44 {dimension_numbers = #tpu.dot_dimension_numbers<[1], [0], [0], [1], [0, 0, 1, 1], [], []>} : vector<2x32xf32>, vector<32x128xf32>, vector<2x128xf32> -> vector<2x128xf32>
    %145 = arith.addf %143, %144 : vector<2x128xf32>
    %146 = arith.negf %145 : vector<2x128xf32>
    %147 = math.exp %146 : vector<2x128xf32>
    %cst_45 = arith.constant 1.000000e+00 : f32
    %148 = vector.broadcast %cst_45 : f32 to vector<2x128xf32>
    %149 = arith.addf %148, %147 : vector<2x128xf32>
    %150 = arith.divf %148, %149 : vector<2x128xf32>
    %151 = math.tanh %145 : vector<2x128xf32>
    %152 = vector.extract_strided_slice %150 {offsets = [0, 0], sizes = [2, 32], strides = [1, 1]} : vector<2x128xf32> to vector<2x32xf32>
    %153 = vector.extract_strided_slice %150 {offsets = [0, 32], sizes = [2, 32], strides = [1, 1]} : vector<2x128xf32> to vector<2x32xf32>
    %154 = vector.extract_strided_slice %151 {offsets = [0, 64], sizes = [2, 32], strides = [1, 1]} : vector<2x128xf32> to vector<2x32xf32>
    %155 = vector.extract_strided_slice %150 {offsets = [0, 96], sizes = [2, 32], strides = [1, 1]} : vector<2x128xf32> to vector<2x32xf32>
    %156 = arith.mulf %153, %138 : vector<2x32xf32>
    %157 = arith.mulf %152, %154 : vector<2x32xf32>
    %158 = arith.addf %156, %157 : vector<2x32xf32>
    %159 = math.tanh %158 : vector<2x32xf32>
    %160 = arith.mulf %155, %159 : vector<2x32xf32>
    %161 = arith.index_cast %141 : i32 to index
    %c0_46 = arith.constant 0 : index
    %162 = vector.load %arg2[%161, %c0_46] : memref<16x1xf32, #tpu.memory_space<vmem>>, vector<2x1xf32>
    %cst_47 = arith.constant 5.000000e-01 : f32
    %163 = vector.broadcast %cst_47 : f32 to vector<2x1xf32>
    %164 = arith.cmpf ogt, %162, %163 : vector<2x1xf32>
    %165 = vector.shape_cast %164 : vector<2x1xi1> to vector<2x1xi1>
    %166 = vector.broadcast %165 : vector<2x1xi1> to vector<2x32xi1>
    %167 = arith.select %166, %160, %135 : vector<2x32xi1>, vector<2x32xf32>
    %168 = vector.shape_cast %164 : vector<2x1xi1> to vector<2x1xi1>
    %169 = vector.broadcast %168 : vector<2x1xi1> to vector<2x32xi1>
    %170 = arith.select %169, %158, %138 : vector<2x32xi1>, vector<2x32xf32>
    %171 = arith.index_cast %141 : i32 to index
    %c0_48 = arith.constant 0 : index
    %172 = vector.load %arg10[%171, %c0_48] : memref<16x32xf32, #tpu.memory_space<vmem>>, vector<2x32xf32>
    tpu.vector_store %arg10[%171, %c0_48], %167 {strides = array<i32>} : memref<16x32xf32, #tpu.memory_space<vmem>>, vector<2x32xf32>,
    %c5_i32 = arith.constant 5 : i32
    %c2_i32_49 = arith.constant 2 : i32
    %173 = arith.muli %c5_i32, %c2_i32_49 : i32
    %174 = arith.index_cast %173 : i32 to index
    %c0_50 = arith.constant 0 : index
    %175 = vector.load %arg11[%174, %c0_50] : memref<16x128xf32, #tpu.memory_space<vmem>>, vector<2x128xf32>
    %cst_51 = arith.constant dense<0.000000e+00> : vector<2x128xf32>
    %176 = tpu.matmul %167, %10, %cst_51 {dimension_numbers = #tpu.dot_dimension_numbers<[1], [0], [0], [1], [0, 0, 1, 1], [], []>} : vector<2x32xf32>, vector<32x128xf32>, vector<2x128xf32> -> vector<2x128xf32>
    %177 = arith.addf %175, %176 : vector<2x128xf32>
    %178 = arith.negf %177 : vector<2x128xf32>
    %179 = math.exp %178 : vector<2x128xf32>
    %cst_52 = arith.constant 1.000000e+00 : f32
    %180 = vector.broadcast %cst_52 : f32 to vector<2x128xf32>
    %181 = arith.addf %180, %179 : vector<2x128xf32>
    %182 = arith.divf %180, %181 : vector<2x128xf32>
    %183 = math.tanh %177 : vector<2x128xf32>
    %184 = vector.extract_strided_slice %182 {offsets = [0, 0], sizes = [2, 32], strides = [1, 1]} : vector<2x128xf32> to vector<2x32xf32>
    %185 = vector.extract_strided_slice %182 {offsets = [0, 32], sizes = [2, 32], strides = [1, 1]} : vector<2x128xf32> to vector<2x32xf32>
    %186 = vector.extract_strided_slice %183 {offsets = [0, 64], sizes = [2, 32], strides = [1, 1]} : vector<2x128xf32> to vector<2x32xf32>
    %187 = vector.extract_strided_slice %182 {offsets = [0, 96], sizes = [2, 32], strides = [1, 1]} : vector<2x128xf32> to vector<2x32xf32>
    %188 = arith.mulf %185, %170 : vector<2x32xf32>
    %189 = arith.mulf %184, %186 : vector<2x32xf32>
    %190 = arith.addf %188, %189 : vector<2x32xf32>
    %191 = math.tanh %190 : vector<2x32xf32>
    %192 = arith.mulf %187, %191 : vector<2x32xf32>
    %193 = arith.index_cast %173 : i32 to index
    %c0_53 = arith.constant 0 : index
    %194 = vector.load %arg2[%193, %c0_53] : memref<16x1xf32, #tpu.memory_space<vmem>>, vector<2x1xf32>
    %cst_54 = arith.constant 5.000000e-01 : f32
    %195 = vector.broadcast %cst_54 : f32 to vector<2x1xf32>
    %196 = arith.cmpf ogt, %194, %195 : vector<2x1xf32>
    %197 = vector.shape_cast %196 : vector<2x1xi1> to vector<2x1xi1>
    %198 = vector.broadcast %197 : vector<2x1xi1> to vector<2x32xi1>
    %199 = arith.select %198, %192, %167 : vector<2x32xi1>, vector<2x32xf32>
    %200 = vector.shape_cast %196 : vector<2x1xi1> to vector<2x1xi1>
    %201 = vector.broadcast %200 : vector<2x1xi1> to vector<2x32xi1>
    %202 = arith.select %201, %190, %170 : vector<2x32xi1>, vector<2x32xf32>
    %203 = arith.index_cast %173 : i32 to index
    %c0_55 = arith.constant 0 : index
    %204 = vector.load %arg10[%203, %c0_55] : memref<16x32xf32, #tpu.memory_space<vmem>>, vector<2x32xf32>
    tpu.vector_store %arg10[%203, %c0_55], %199 {strides = array<i32>} : memref<16x32xf32, #tpu.memory_space<vmem>>, vector<2x32xf32>,
    %c6_i32 = arith.constant 6 : i32
    %c2_i32_56 = arith.constant 2 : i32
    %205 = arith.muli %c6_i32, %c2_i32_56 : i32
    %206 = arith.index_cast %205 : i32 to index
    %c0_57 = arith.constant 0 : index
    %207 = vector.load %arg11[%206, %c0_57] : memref<16x128xf32, #tpu.memory_space<vmem>>, vector<2x128xf32>
    %cst_58 = arith.constant dense<0.000000e+00> : vector<2x128xf32>
    %208 = tpu.matmul %199, %10, %cst_58 {dimension_numbers = #tpu.dot_dimension_numbers<[1], [0], [0], [1], [0, 0, 1, 1], [], []>} : vector<2x32xf32>, vector<32x128xf32>, vector<2x128xf32> -> vector<2x128xf32>
    %209 = arith.addf %207, %208 : vector<2x128xf32>
    %210 = arith.negf %209 : vector<2x128xf32>
    %211 = math.exp %210 : vector<2x128xf32>
    %cst_59 = arith.constant 1.000000e+00 : f32
    %212 = vector.broadcast %cst_59 : f32 to vector<2x128xf32>
    %213 = arith.addf %212, %211 : vector<2x128xf32>
    %214 = arith.divf %212, %213 : vector<2x128xf32>
    %215 = math.tanh %209 : vector<2x128xf32>
    %216 = vector.extract_strided_slice %214 {offsets = [0, 0], sizes = [2, 32], strides = [1, 1]} : vector<2x128xf32> to vector<2x32xf32>
    %217 = vector.extract_strided_slice %214 {offsets = [0, 32], sizes = [2, 32], strides = [1, 1]} : vector<2x128xf32> to vector<2x32xf32>
    %218 = vector.extract_strided_slice %215 {offsets = [0, 64], sizes = [2, 32], strides = [1, 1]} : vector<2x128xf32> to vector<2x32xf32>
    %219 = vector.extract_strided_slice %214 {offsets = [0, 96], sizes = [2, 32], strides = [1, 1]} : vector<2x128xf32> to vector<2x32xf32>
    %220 = arith.mulf %217, %202 : vector<2x32xf32>
    %221 = arith.mulf %216, %218 : vector<2x32xf32>
    %222 = arith.addf %220, %221 : vector<2x32xf32>
    %223 = math.tanh %222 : vector<2x32xf32>
    %224 = arith.mulf %219, %223 : vector<2x32xf32>
    %225 = arith.index_cast %205 : i32 to index
    %c0_60 = arith.constant 0 : index
    %226 = vector.load %arg2[%225, %c0_60] : memref<16x1xf32, #tpu.memory_space<vmem>>, vector<2x1xf32>
    %cst_61 = arith.constant 5.000000e-01 : f32
    %227 = vector.broadcast %cst_61 : f32 to vector<2x1xf32>
    %228 = arith.cmpf ogt, %226, %227 : vector<2x1xf32>
    %229 = vector.shape_cast %228 : vector<2x1xi1> to vector<2x1xi1>
    %230 = vector.broadcast %229 : vector<2x1xi1> to vector<2x32xi1>
    %231 = arith.select %230, %224, %199 : vector<2x32xi1>, vector<2x32xf32>
    %232 = vector.shape_cast %228 : vector<2x1xi1> to vector<2x1xi1>
    %233 = vector.broadcast %232 : vector<2x1xi1> to vector<2x32xi1>
    %234 = arith.select %233, %222, %202 : vector<2x32xi1>, vector<2x32xf32>
    %235 = arith.index_cast %205 : i32 to index
    %c0_62 = arith.constant 0 : index
    %236 = vector.load %arg10[%235, %c0_62] : memref<16x32xf32, #tpu.memory_space<vmem>>, vector<2x32xf32>
    tpu.vector_store %arg10[%235, %c0_62], %231 {strides = array<i32>} : memref<16x32xf32, #tpu.memory_space<vmem>>, vector<2x32xf32>,
    %c7_i32 = arith.constant 7 : i32
    %c2_i32_63 = arith.constant 2 : i32
    %237 = arith.muli %c7_i32, %c2_i32_63 : i32
    %238 = arith.index_cast %237 : i32 to index
    %c0_64 = arith.constant 0 : index
    %239 = vector.load %arg11[%238, %c0_64] : memref<16x128xf32, #tpu.memory_space<vmem>>, vector<2x128xf32>
    %cst_65 = arith.constant dense<0.000000e+00> : vector<2x128xf32>
    %240 = tpu.matmul %231, %10, %cst_65 {dimension_numbers = #tpu.dot_dimension_numbers<[1], [0], [0], [1], [0, 0, 1, 1], [], []>} : vector<2x32xf32>, vector<32x128xf32>, vector<2x128xf32> -> vector<2x128xf32>
    %241 = arith.addf %239, %240 : vector<2x128xf32>
    %242 = arith.negf %241 : vector<2x128xf32>
    %243 = math.exp %242 : vector<2x128xf32>
    %cst_66 = arith.constant 1.000000e+00 : f32
    %244 = vector.broadcast %cst_66 : f32 to vector<2x128xf32>
    %245 = arith.addf %244, %243 : vector<2x128xf32>
    %246 = arith.divf %244, %245 : vector<2x128xf32>
    %247 = math.tanh %241 : vector<2x128xf32>
    %248 = vector.extract_strided_slice %246 {offsets = [0, 0], sizes = [2, 32], strides = [1, 1]} : vector<2x128xf32> to vector<2x32xf32>
    %249 = vector.extract_strided_slice %246 {offsets = [0, 32], sizes = [2, 32], strides = [1, 1]} : vector<2x128xf32> to vector<2x32xf32>
    %250 = vector.extract_strided_slice %247 {offsets = [0, 64], sizes = [2, 32], strides = [1, 1]} : vector<2x128xf32> to vector<2x32xf32>
    %251 = vector.extract_strided_slice %246 {offsets = [0, 96], sizes = [2, 32], strides = [1, 1]} : vector<2x128xf32> to vector<2x32xf32>
    %252 = arith.mulf %249, %234 : vector<2x32xf32>
    %253 = arith.mulf %248, %250 : vector<2x32xf32>
    %254 = arith.addf %252, %253 : vector<2x32xf32>
    %255 = math.tanh %254 : vector<2x32xf32>
    %256 = arith.mulf %251, %255 : vector<2x32xf32>
    %257 = arith.index_cast %237 : i32 to index
    %c0_67 = arith.constant 0 : index
    %258 = vector.load %arg2[%257, %c0_67] : memref<16x1xf32, #tpu.memory_space<vmem>>, vector<2x1xf32>
    %cst_68 = arith.constant 5.000000e-01 : f32
    %259 = vector.broadcast %cst_68 : f32 to vector<2x1xf32>
    %260 = arith.cmpf ogt, %258, %259 : vector<2x1xf32>
    %261 = vector.shape_cast %260 : vector<2x1xi1> to vector<2x1xi1>
    %262 = vector.broadcast %261 : vector<2x1xi1> to vector<2x32xi1>
    %263 = arith.select %262, %256, %231 : vector<2x32xi1>, vector<2x32xf32>
    %264 = vector.shape_cast %260 : vector<2x1xi1> to vector<2x1xi1>
    %265 = vector.broadcast %264 : vector<2x1xi1> to vector<2x32xi1>
    %266 = arith.select %265, %254, %234 : vector<2x32xi1>, vector<2x32xf32>
    %267 = arith.index_cast %237 : i32 to index
    %c0_69 = arith.constant 0 : index
    %268 = vector.load %arg10[%267, %c0_69] : memref<16x32xf32, #tpu.memory_space<vmem>>, vector<2x32xf32>
    tpu.vector_store %arg10[%267, %c0_69], %263 {strides = array<i32>} : memref<16x32xf32, #tpu.memory_space<vmem>>, vector<2x32xf32>,
    %c8_i32 = arith.constant 8 : i32
    %c0_70 = arith.constant 0 : index
    %c0_71 = arith.constant 0 : index
    %269 = vector.load %arg10[%c0_70, %c0_71] : memref<16x32xf32, #tpu.memory_space<vmem>>, vector<16x32xf32>
    %c1 = arith.constant 1 : index
    %c0_72 = arith.constant 0 : index
    %c0_73 = arith.constant 0 : index
    %270 = vector.load %arg3[%c1, %c0_72, %c0_73] : memref<2x32x128xf32, #tpu.memory_space<vmem>>, vector<1x32x128xf32>
    %271 = vector.shape_cast %270 : vector<1x32x128xf32> to vector<32x128xf32>
    %cst_74 = arith.constant dense<0.000000e+00> : vector<16x128xf32>
    %272 = tpu.matmul %269, %271, %cst_74 {dimension_numbers = #tpu.dot_dimension_numbers<[1], [0], [0], [1], [0, 0, 1, 1], [], []>} : vector<16x32xf32>, vector<32x128xf32>, vector<16x128xf32> -> vector<16x128xf32>
    %c1_75 = arith.constant 1 : index
    %c0_76 = arith.constant 0 : index
    %c0_77 = arith.constant 0 : index
    %273 = vector.load %arg5[%c1_75, %c0_76, %c0_77] : memref<2x1x128xf32, #tpu.memory_space<vmem>>, vector<1x1x128xf32>
    %274 = vector.shape_cast %273 : vector<1x1x128xf32> to vector<1x128xf32>
    %275 = vector.broadcast %274 : vector<1x128xf32> to vector<16x128xf32>
    %276 = arith.addf %272, %275 : vector<16x128xf32>
    %c0_78 = arith.constant 0 : index
    %c0_79 = arith.constant 0 : index
    %277 = vector.load %arg11[%c0_78, %c0_79] : memref<16x128xf32, #tpu.memory_space<vmem>>, vector<16x128xf32>
    tpu.vector_store %arg11[%c0_78, %c0_79], %276 {strides = array<i32>} : memref<16x128xf32, #tpu.memory_space<vmem>>, vector<16x128xf32>,
    %c1_80 = arith.constant 1 : index
    %c0_81 = arith.constant 0 : index
    %c0_82 = arith.constant 0 : index
    %278 = vector.load %arg4[%c1_80, %c0_81, %c0_82] : memref<2x32x128xf32, #tpu.memory_space<vmem>>, vector<1x32x128xf32>
    %279 = vector.shape_cast %278 : vector<1x32x128xf32> to vector<32x128xf32>
    %cst_83 = arith.constant 0.000000e+00 : f32
    %280 = vector.broadcast %cst_83 : f32 to vector<2x32xf32>
    %cst_84 = arith.constant 0.000000e+00 : f32
    %281 = vector.broadcast %cst_84 : f32 to vector<2x32xf32>
    %c0_i32_85 = arith.constant 0 : i32
    %c2_i32_86 = arith.constant 2 : i32
    %282 = arith.muli %c0_i32_85, %c2_i32_86 : i32
    %283 = arith.index_cast %282 : i32 to index
    %c0_87 = arith.constant 0 : index
    %284 = vector.load %arg11[%283, %c0_87] : memref<16x128xf32, #tpu.memory_space<vmem>>, vector<2x128xf32>
    %cst_88 = arith.constant dense<0.000000e+00> : vector<2x128xf32>
    %285 = tpu.matmul %280, %279, %cst_88 {dimension_numbers = #tpu.dot_dimension_numbers<[1], [0], [0], [1], [0, 0, 1, 1], [], []>} : vector<2x32xf32>, vector<32x128xf32>, vector<2x128xf32> -> vector<2x128xf32>
    %286 = arith.addf %284, %285 : vector<2x128xf32>
    %287 = arith.negf %286 : vector<2x128xf32>
    %288 = math.exp %287 : vector<2x128xf32>
    %cst_89 = arith.constant 1.000000e+00 : f32
    %289 = vector.broadcast %cst_89 : f32 to vector<2x128xf32>
    %290 = arith.addf %289, %288 : vector<2x128xf32>
    %291 = arith.divf %289, %290 : vector<2x128xf32>
    %292 = math.tanh %286 : vector<2x128xf32>
    %293 = vector.extract_strided_slice %291 {offsets = [0, 0], sizes = [2, 32], strides = [1, 1]} : vector<2x128xf32> to vector<2x32xf32>
    %294 = vector.extract_strided_slice %291 {offsets = [0, 32], sizes = [2, 32], strides = [1, 1]} : vector<2x128xf32> to vector<2x32xf32>
    %295 = vector.extract_strided_slice %292 {offsets = [0, 64], sizes = [2, 32], strides = [1, 1]} : vector<2x128xf32> to vector<2x32xf32>
    %296 = vector.extract_strided_slice %291 {offsets = [0, 96], sizes = [2, 32], strides = [1, 1]} : vector<2x128xf32> to vector<2x32xf32>
    %297 = arith.mulf %294, %281 : vector<2x32xf32>
    %298 = arith.mulf %293, %295 : vector<2x32xf32>
    %299 = arith.addf %297, %298 : vector<2x32xf32>
    %300 = math.tanh %299 : vector<2x32xf32>
    %301 = arith.mulf %296, %300 : vector<2x32xf32>
    %302 = arith.index_cast %282 : i32 to index
    %c0_90 = arith.constant 0 : index
    %303 = vector.load %arg2[%302, %c0_90] : memref<16x1xf32, #tpu.memory_space<vmem>>, vector<2x1xf32>
    %cst_91 = arith.constant 5.000000e-01 : f32
    %304 = vector.broadcast %cst_91 : f32 to vector<2x1xf32>
    %305 = arith.cmpf ogt, %303, %304 : vector<2x1xf32>
    %306 = vector.shape_cast %305 : vector<2x1xi1> to vector<2x1xi1>
    %307 = vector.broadcast %306 : vector<2x1xi1> to vector<2x32xi1>
    %308 = arith.select %307, %301, %280 : vector<2x32xi1>, vector<2x32xf32>
    %309 = vector.shape_cast %305 : vector<2x1xi1> to vector<2x1xi1>
    %310 = vector.broadcast %309 : vector<2x1xi1> to vector<2x32xi1>
    %311 = arith.select %310, %299, %281 : vector<2x32xi1>, vector<2x32xf32>
    %c1_i32_92 = arith.constant 1 : i32
    %c2_i32_93 = arith.constant 2 : i32
    %312 = arith.muli %c1_i32_92, %c2_i32_93 : i32
    %313 = arith.index_cast %312 : i32 to index
    %c0_94 = arith.constant 0 : index
    %314 = vector.load %arg11[%313, %c0_94] : memref<16x128xf32, #tpu.memory_space<vmem>>, vector<2x128xf32>
    %cst_95 = arith.constant dense<0.000000e+00> : vector<2x128xf32>
    %315 = tpu.matmul %308, %279, %cst_95 {dimension_numbers = #tpu.dot_dimension_numbers<[1], [0], [0], [1], [0, 0, 1, 1], [], []>} : vector<2x32xf32>, vector<32x128xf32>, vector<2x128xf32> -> vector<2x128xf32>
    %316 = arith.addf %314, %315 : vector<2x128xf32>
    %317 = arith.negf %316 : vector<2x128xf32>
    %318 = math.exp %317 : vector<2x128xf32>
    %cst_96 = arith.constant 1.000000e+00 : f32
    %319 = vector.broadcast %cst_96 : f32 to vector<2x128xf32>
    %320 = arith.addf %319, %318 : vector<2x128xf32>
    %321 = arith.divf %319, %320 : vector<2x128xf32>
    %322 = math.tanh %316 : vector<2x128xf32>
    %323 = vector.extract_strided_slice %321 {offsets = [0, 0], sizes = [2, 32], strides = [1, 1]} : vector<2x128xf32> to vector<2x32xf32>
    %324 = vector.extract_strided_slice %321 {offsets = [0, 32], sizes = [2, 32], strides = [1, 1]} : vector<2x128xf32> to vector<2x32xf32>
    %325 = vector.extract_strided_slice %322 {offsets = [0, 64], sizes = [2, 32], strides = [1, 1]} : vector<2x128xf32> to vector<2x32xf32>
    %326 = vector.extract_strided_slice %321 {offsets = [0, 96], sizes = [2, 32], strides = [1, 1]} : vector<2x128xf32> to vector<2x32xf32>
    %327 = arith.mulf %324, %311 : vector<2x32xf32>
    %328 = arith.mulf %323, %325 : vector<2x32xf32>
    %329 = arith.addf %327, %328 : vector<2x32xf32>
    %330 = math.tanh %329 : vector<2x32xf32>
    %331 = arith.mulf %326, %330 : vector<2x32xf32>
    %332 = arith.index_cast %312 : i32 to index
    %c0_97 = arith.constant 0 : index
    %333 = vector.load %arg2[%332, %c0_97] : memref<16x1xf32, #tpu.memory_space<vmem>>, vector<2x1xf32>
    %cst_98 = arith.constant 5.000000e-01 : f32
    %334 = vector.broadcast %cst_98 : f32 to vector<2x1xf32>
    %335 = arith.cmpf ogt, %333, %334 : vector<2x1xf32>
    %336 = vector.shape_cast %335 : vector<2x1xi1> to vector<2x1xi1>
    %337 = vector.broadcast %336 : vector<2x1xi1> to vector<2x32xi1>
    %338 = arith.select %337, %331, %308 : vector<2x32xi1>, vector<2x32xf32>
    %339 = vector.shape_cast %335 : vector<2x1xi1> to vector<2x1xi1>
    %340 = vector.broadcast %339 : vector<2x1xi1> to vector<2x32xi1>
    %341 = arith.select %340, %329, %311 : vector<2x32xi1>, vector<2x32xf32>
    %c2_i32_99 = arith.constant 2 : i32
    %c2_i32_100 = arith.constant 2 : i32
    %342 = arith.muli %c2_i32_99, %c2_i32_100 : i32
    %343 = arith.index_cast %342 : i32 to index
    %c0_101 = arith.constant 0 : index
    %344 = vector.load %arg11[%343, %c0_101] : memref<16x128xf32, #tpu.memory_space<vmem>>, vector<2x128xf32>
    %cst_102 = arith.constant dense<0.000000e+00> : vector<2x128xf32>
    %345 = tpu.matmul %338, %279, %cst_102 {dimension_numbers = #tpu.dot_dimension_numbers<[1], [0], [0], [1], [0, 0, 1, 1], [], []>} : vector<2x32xf32>, vector<32x128xf32>, vector<2x128xf32> -> vector<2x128xf32>
    %346 = arith.addf %344, %345 : vector<2x128xf32>
    %347 = arith.negf %346 : vector<2x128xf32>
    %348 = math.exp %347 : vector<2x128xf32>
    %cst_103 = arith.constant 1.000000e+00 : f32
    %349 = vector.broadcast %cst_103 : f32 to vector<2x128xf32>
    %350 = arith.addf %349, %348 : vector<2x128xf32>
    %351 = arith.divf %349, %350 : vector<2x128xf32>
    %352 = math.tanh %346 : vector<2x128xf32>
    %353 = vector.extract_strided_slice %351 {offsets = [0, 0], sizes = [2, 32], strides = [1, 1]} : vector<2x128xf32> to vector<2x32xf32>
    %354 = vector.extract_strided_slice %351 {offsets = [0, 32], sizes = [2, 32], strides = [1, 1]} : vector<2x128xf32> to vector<2x32xf32>
    %355 = vector.extract_strided_slice %352 {offsets = [0, 64], sizes = [2, 32], strides = [1, 1]} : vector<2x128xf32> to vector<2x32xf32>
    %356 = vector.extract_strided_slice %351 {offsets = [0, 96], sizes = [2, 32], strides = [1, 1]} : vector<2x128xf32> to vector<2x32xf32>
    %357 = arith.mulf %354, %341 : vector<2x32xf32>
    %358 = arith.mulf %353, %355 : vector<2x32xf32>
    %359 = arith.addf %357, %358 : vector<2x32xf32>
    %360 = math.tanh %359 : vector<2x32xf32>
    %361 = arith.mulf %356, %360 : vector<2x32xf32>
    %362 = arith.index_cast %342 : i32 to index
    %c0_104 = arith.constant 0 : index
    %363 = vector.load %arg2[%362, %c0_104] : memref<16x1xf32, #tpu.memory_space<vmem>>, vector<2x1xf32>
    %cst_105 = arith.constant 5.000000e-01 : f32
    %364 = vector.broadcast %cst_105 : f32 to vector<2x1xf32>
    %365 = arith.cmpf ogt, %363, %364 : vector<2x1xf32>
    %366 = vector.shape_cast %365 : vector<2x1xi1> to vector<2x1xi1>
    %367 = vector.broadcast %366 : vector<2x1xi1> to vector<2x32xi1>
    %368 = arith.select %367, %361, %338 : vector<2x32xi1>, vector<2x32xf32>
    %369 = vector.shape_cast %365 : vector<2x1xi1> to vector<2x1xi1>
    %370 = vector.broadcast %369 : vector<2x1xi1> to vector<2x32xi1>
    %371 = arith.select %370, %359, %341 : vector<2x32xi1>, vector<2x32xf32>
    %c3_i32_106 = arith.constant 3 : i32
    %c2_i32_107 = arith.constant 2 : i32
    %372 = arith.muli %c3_i32_106, %c2_i32_107 : i32
    %373 = arith.index_cast %372 : i32 to index
    %c0_108 = arith.constant 0 : index
    %374 = vector.load %arg11[%373, %c0_108] : memref<16x128xf32, #tpu.memory_space<vmem>>, vector<2x128xf32>
    %cst_109 = arith.constant dense<0.000000e+00> : vector<2x128xf32>
    %375 = tpu.matmul %368, %279, %cst_109 {dimension_numbers = #tpu.dot_dimension_numbers<[1], [0], [0], [1], [0, 0, 1, 1], [], []>} : vector<2x32xf32>, vector<32x128xf32>, vector<2x128xf32> -> vector<2x128xf32>
    %376 = arith.addf %374, %375 : vector<2x128xf32>
    %377 = arith.negf %376 : vector<2x128xf32>
    %378 = math.exp %377 : vector<2x128xf32>
    %cst_110 = arith.constant 1.000000e+00 : f32
    %379 = vector.broadcast %cst_110 : f32 to vector<2x128xf32>
    %380 = arith.addf %379, %378 : vector<2x128xf32>
    %381 = arith.divf %379, %380 : vector<2x128xf32>
    %382 = math.tanh %376 : vector<2x128xf32>
    %383 = vector.extract_strided_slice %381 {offsets = [0, 0], sizes = [2, 32], strides = [1, 1]} : vector<2x128xf32> to vector<2x32xf32>
    %384 = vector.extract_strided_slice %381 {offsets = [0, 32], sizes = [2, 32], strides = [1, 1]} : vector<2x128xf32> to vector<2x32xf32>
    %385 = vector.extract_strided_slice %382 {offsets = [0, 64], sizes = [2, 32], strides = [1, 1]} : vector<2x128xf32> to vector<2x32xf32>
    %386 = vector.extract_strided_slice %381 {offsets = [0, 96], sizes = [2, 32], strides = [1, 1]} : vector<2x128xf32> to vector<2x32xf32>
    %387 = arith.mulf %384, %371 : vector<2x32xf32>
    %388 = arith.mulf %383, %385 : vector<2x32xf32>
    %389 = arith.addf %387, %388 : vector<2x32xf32>
    %390 = math.tanh %389 : vector<2x32xf32>
    %391 = arith.mulf %386, %390 : vector<2x32xf32>
    %392 = arith.index_cast %372 : i32 to index
    %c0_111 = arith.constant 0 : index
    %393 = vector.load %arg2[%392, %c0_111] : memref<16x1xf32, #tpu.memory_space<vmem>>, vector<2x1xf32>
    %cst_112 = arith.constant 5.000000e-01 : f32
    %394 = vector.broadcast %cst_112 : f32 to vector<2x1xf32>
    %395 = arith.cmpf ogt, %393, %394 : vector<2x1xf32>
    %396 = vector.shape_cast %395 : vector<2x1xi1> to vector<2x1xi1>
    %397 = vector.broadcast %396 : vector<2x1xi1> to vector<2x32xi1>
    %398 = arith.select %397, %391, %368 : vector<2x32xi1>, vector<2x32xf32>
    %399 = vector.shape_cast %395 : vector<2x1xi1> to vector<2x1xi1>
    %400 = vector.broadcast %399 : vector<2x1xi1> to vector<2x32xi1>
    %401 = arith.select %400, %389, %371 : vector<2x32xi1>, vector<2x32xf32>
    %c4_i32_113 = arith.constant 4 : i32
    %c2_i32_114 = arith.constant 2 : i32
    %402 = arith.muli %c4_i32_113, %c2_i32_114 : i32
    %403 = arith.index_cast %402 : i32 to index
    %c0_115 = arith.constant 0 : index
    %404 = vector.load %arg11[%403, %c0_115] : memref<16x128xf32, #tpu.memory_space<vmem>>, vector<2x128xf32>
    %cst_116 = arith.constant dense<0.000000e+00> : vector<2x128xf32>
    %405 = tpu.matmul %398, %279, %cst_116 {dimension_numbers = #tpu.dot_dimension_numbers<[1], [0], [0], [1], [0, 0, 1, 1], [], []>} : vector<2x32xf32>, vector<32x128xf32>, vector<2x128xf32> -> vector<2x128xf32>
    %406 = arith.addf %404, %405 : vector<2x128xf32>
    %407 = arith.negf %406 : vector<2x128xf32>
    %408 = math.exp %407 : vector<2x128xf32>
    %cst_117 = arith.constant 1.000000e+00 : f32
    %409 = vector.broadcast %cst_117 : f32 to vector<2x128xf32>
    %410 = arith.addf %409, %408 : vector<2x128xf32>
    %411 = arith.divf %409, %410 : vector<2x128xf32>
    %412 = math.tanh %406 : vector<2x128xf32>
    %413 = vector.extract_strided_slice %411 {offsets = [0, 0], sizes = [2, 32], strides = [1, 1]} : vector<2x128xf32> to vector<2x32xf32>
    %414 = vector.extract_strided_slice %411 {offsets = [0, 32], sizes = [2, 32], strides = [1, 1]} : vector<2x128xf32> to vector<2x32xf32>
    %415 = vector.extract_strided_slice %412 {offsets = [0, 64], sizes = [2, 32], strides = [1, 1]} : vector<2x128xf32> to vector<2x32xf32>
    %416 = vector.extract_strided_slice %411 {offsets = [0, 96], sizes = [2, 32], strides = [1, 1]} : vector<2x128xf32> to vector<2x32xf32>
    %417 = arith.mulf %414, %401 : vector<2x32xf32>
    %418 = arith.mulf %413, %415 : vector<2x32xf32>
    %419 = arith.addf %417, %418 : vector<2x32xf32>
    %420 = math.tanh %419 : vector<2x32xf32>
    %421 = arith.mulf %416, %420 : vector<2x32xf32>
    %422 = arith.index_cast %402 : i32 to index
    %c0_118 = arith.constant 0 : index
    %423 = vector.load %arg2[%422, %c0_118] : memref<16x1xf32, #tpu.memory_space<vmem>>, vector<2x1xf32>
    %cst_119 = arith.constant 5.000000e-01 : f32
    %424 = vector.broadcast %cst_119 : f32 to vector<2x1xf32>
    %425 = arith.cmpf ogt, %423, %424 : vector<2x1xf32>
    %426 = vector.shape_cast %425 : vector<2x1xi1> to vector<2x1xi1>
    %427 = vector.broadcast %426 : vector<2x1xi1> to vector<2x32xi1>
    %428 = arith.select %427, %421, %398 : vector<2x32xi1>, vector<2x32xf32>
    %429 = vector.shape_cast %425 : vector<2x1xi1> to vector<2x1xi1>
    %430 = vector.broadcast %429 : vector<2x1xi1> to vector<2x32xi1>
    %431 = arith.select %430, %419, %401 : vector<2x32xi1>, vector<2x32xf32>
    %c5_i32_120 = arith.constant 5 : i32
    %c2_i32_121 = arith.constant 2 : i32
    %432 = arith.muli %c5_i32_120, %c2_i32_121 : i32
    %433 = arith.index_cast %432 : i32 to index
    %c0_122 = arith.constant 0 : index
    %434 = vector.load %arg11[%433, %c0_122] : memref<16x128xf32, #tpu.memory_space<vmem>>, vector<2x128xf32>
    %cst_123 = arith.constant dense<0.000000e+00> : vector<2x128xf32>
    %435 = tpu.matmul %428, %279, %cst_123 {dimension_numbers = #tpu.dot_dimension_numbers<[1], [0], [0], [1], [0, 0, 1, 1], [], []>} : vector<2x32xf32>, vector<32x128xf32>, vector<2x128xf32> -> vector<2x128xf32>
    %436 = arith.addf %434, %435 : vector<2x128xf32>
    %437 = arith.negf %436 : vector<2x128xf32>
    %438 = math.exp %437 : vector<2x128xf32>
    %cst_124 = arith.constant 1.000000e+00 : f32
    %439 = vector.broadcast %cst_124 : f32 to vector<2x128xf32>
    %440 = arith.addf %439, %438 : vector<2x128xf32>
    %441 = arith.divf %439, %440 : vector<2x128xf32>
    %442 = math.tanh %436 : vector<2x128xf32>
    %443 = vector.extract_strided_slice %441 {offsets = [0, 0], sizes = [2, 32], strides = [1, 1]} : vector<2x128xf32> to vector<2x32xf32>
    %444 = vector.extract_strided_slice %441 {offsets = [0, 32], sizes = [2, 32], strides = [1, 1]} : vector<2x128xf32> to vector<2x32xf32>
    %445 = vector.extract_strided_slice %442 {offsets = [0, 64], sizes = [2, 32], strides = [1, 1]} : vector<2x128xf32> to vector<2x32xf32>
    %446 = vector.extract_strided_slice %441 {offsets = [0, 96], sizes = [2, 32], strides = [1, 1]} : vector<2x128xf32> to vector<2x32xf32>
    %447 = arith.mulf %444, %431 : vector<2x32xf32>
    %448 = arith.mulf %443, %445 : vector<2x32xf32>
    %449 = arith.addf %447, %448 : vector<2x32xf32>
    %450 = math.tanh %449 : vector<2x32xf32>
    %451 = arith.mulf %446, %450 : vector<2x32xf32>
    %452 = arith.index_cast %432 : i32 to index
    %c0_125 = arith.constant 0 : index
    %453 = vector.load %arg2[%452, %c0_125] : memref<16x1xf32, #tpu.memory_space<vmem>>, vector<2x1xf32>
    %cst_126 = arith.constant 5.000000e-01 : f32
    %454 = vector.broadcast %cst_126 : f32 to vector<2x1xf32>
    %455 = arith.cmpf ogt, %453, %454 : vector<2x1xf32>
    %456 = vector.shape_cast %455 : vector<2x1xi1> to vector<2x1xi1>
    %457 = vector.broadcast %456 : vector<2x1xi1> to vector<2x32xi1>
    %458 = arith.select %457, %451, %428 : vector<2x32xi1>, vector<2x32xf32>
    %459 = vector.shape_cast %455 : vector<2x1xi1> to vector<2x1xi1>
    %460 = vector.broadcast %459 : vector<2x1xi1> to vector<2x32xi1>
    %461 = arith.select %460, %449, %431 : vector<2x32xi1>, vector<2x32xf32>
    %c6_i32_127 = arith.constant 6 : i32
    %c2_i32_128 = arith.constant 2 : i32
    %462 = arith.muli %c6_i32_127, %c2_i32_128 : i32
    %463 = arith.index_cast %462 : i32 to index
    %c0_129 = arith.constant 0 : index
    %464 = vector.load %arg11[%463, %c0_129] : memref<16x128xf32, #tpu.memory_space<vmem>>, vector<2x128xf32>
    %cst_130 = arith.constant dense<0.000000e+00> : vector<2x128xf32>
    %465 = tpu.matmul %458, %279, %cst_130 {dimension_numbers = #tpu.dot_dimension_numbers<[1], [0], [0], [1], [0, 0, 1, 1], [], []>} : vector<2x32xf32>, vector<32x128xf32>, vector<2x128xf32> -> vector<2x128xf32>
    %466 = arith.addf %464, %465 : vector<2x128xf32>
    %467 = arith.negf %466 : vector<2x128xf32>
    %468 = math.exp %467 : vector<2x128xf32>
    %cst_131 = arith.constant 1.000000e+00 : f32
    %469 = vector.broadcast %cst_131 : f32 to vector<2x128xf32>
    %470 = arith.addf %469, %468 : vector<2x128xf32>
    %471 = arith.divf %469, %470 : vector<2x128xf32>
    %472 = math.tanh %466 : vector<2x128xf32>
    %473 = vector.extract_strided_slice %471 {offsets = [0, 0], sizes = [2, 32], strides = [1, 1]} : vector<2x128xf32> to vector<2x32xf32>
    %474 = vector.extract_strided_slice %471 {offsets = [0, 32], sizes = [2, 32], strides = [1, 1]} : vector<2x128xf32> to vector<2x32xf32>
    %475 = vector.extract_strided_slice %472 {offsets = [0, 64], sizes = [2, 32], strides = [1, 1]} : vector<2x128xf32> to vector<2x32xf32>
    %476 = vector.extract_strided_slice %471 {offsets = [0, 96], sizes = [2, 32], strides = [1, 1]} : vector<2x128xf32> to vector<2x32xf32>
    %477 = arith.mulf %474, %461 : vector<2x32xf32>
    %478 = arith.mulf %473, %475 : vector<2x32xf32>
    %479 = arith.addf %477, %478 : vector<2x32xf32>
    %480 = math.tanh %479 : vector<2x32xf32>
    %481 = arith.mulf %476, %480 : vector<2x32xf32>
    %482 = arith.index_cast %462 : i32 to index
    %c0_132 = arith.constant 0 : index
    %483 = vector.load %arg2[%482, %c0_132] : memref<16x1xf32, #tpu.memory_space<vmem>>, vector<2x1xf32>
    %cst_133 = arith.constant 5.000000e-01 : f32
    %484 = vector.broadcast %cst_133 : f32 to vector<2x1xf32>
    %485 = arith.cmpf ogt, %483, %484 : vector<2x1xf32>
    %486 = vector.shape_cast %485 : vector<2x1xi1> to vector<2x1xi1>
    %487 = vector.broadcast %486 : vector<2x1xi1> to vector<2x32xi1>
    %488 = arith.select %487, %481, %458 : vector<2x32xi1>, vector<2x32xf32>
    %489 = vector.shape_cast %485 : vector<2x1xi1> to vector<2x1xi1>
    %490 = vector.broadcast %489 : vector<2x1xi1> to vector<2x32xi1>
    %491 = arith.select %490, %479, %461 : vector<2x32xi1>, vector<2x32xf32>
    %c7_i32_134 = arith.constant 7 : i32
    %c2_i32_135 = arith.constant 2 : i32
    %492 = arith.muli %c7_i32_134, %c2_i32_135 : i32
    %493 = arith.index_cast %492 : i32 to index
    %c0_136 = arith.constant 0 : index
    %494 = vector.load %arg11[%493, %c0_136] : memref<16x128xf32, #tpu.memory_space<vmem>>, vector<2x128xf32>
    %cst_137 = arith.constant dense<0.000000e+00> : vector<2x128xf32>
    %495 = tpu.matmul %488, %279, %cst_137 {dimension_numbers = #tpu.dot_dimension_numbers<[1], [0], [0], [1], [0, 0, 1, 1], [], []>} : vector<2x32xf32>, vector<32x128xf32>, vector<2x128xf32> -> vector<2x128xf32>
    %496 = arith.addf %494, %495 : vector<2x128xf32>
    %497 = arith.negf %496 : vector<2x128xf32>
    %498 = math.exp %497 : vector<2x128xf32>
    %cst_138 = arith.constant 1.000000e+00 : f32
    %499 = vector.broadcast %cst_138 : f32 to vector<2x128xf32>
    %500 = arith.addf %499, %498 : vector<2x128xf32>
    %501 = arith.divf %499, %500 : vector<2x128xf32>
    %502 = math.tanh %496 : vector<2x128xf32>
    %503 = vector.extract_strided_slice %501 {offsets = [0, 0], sizes = [2, 32], strides = [1, 1]} : vector<2x128xf32> to vector<2x32xf32>
    %504 = vector.extract_strided_slice %501 {offsets = [0, 32], sizes = [2, 32], strides = [1, 1]} : vector<2x128xf32> to vector<2x32xf32>
    %505 = vector.extract_strided_slice %502 {offsets = [0, 64], sizes = [2, 32], strides = [1, 1]} : vector<2x128xf32> to vector<2x32xf32>
    %506 = vector.extract_strided_slice %501 {offsets = [0, 96], sizes = [2, 32], strides = [1, 1]} : vector<2x128xf32> to vector<2x32xf32>
    %507 = arith.mulf %504, %491 : vector<2x32xf32>
    %508 = arith.mulf %503, %505 : vector<2x32xf32>
    %509 = arith.addf %507, %508 : vector<2x32xf32>
    %510 = math.tanh %509 : vector<2x32xf32>
    %511 = arith.mulf %506, %510 : vector<2x32xf32>
    %512 = arith.index_cast %492 : i32 to index
    %c0_139 = arith.constant 0 : index
    %513 = vector.load %arg2[%512, %c0_139] : memref<16x1xf32, #tpu.memory_space<vmem>>, vector<2x1xf32>
    %cst_140 = arith.constant 5.000000e-01 : f32
    %514 = vector.broadcast %cst_140 : f32 to vector<2x1xf32>
    %515 = arith.cmpf ogt, %513, %514 : vector<2x1xf32>
    %516 = vector.shape_cast %515 : vector<2x1xi1> to vector<2x1xi1>
    %517 = vector.broadcast %516 : vector<2x1xi1> to vector<2x32xi1>
    %518 = arith.select %517, %511, %488 : vector<2x32xi1>, vector<2x32xf32>
    %519 = vector.shape_cast %515 : vector<2x1xi1> to vector<2x1xi1>
    %520 = vector.broadcast %519 : vector<2x1xi1> to vector<2x32xi1>
    %521 = arith.select %520, %509, %491 : vector<2x32xi1>, vector<2x32xf32>
    %c8_i32_141 = arith.constant 8 : i32
    %c0_142 = arith.constant 0 : index
    %c0_143 = arith.constant 0 : index
    %522 = vector.load %arg6[%c0_142, %c0_143] : memref<32x128xf32, #tpu.memory_space<vmem>>, vector<32x128xf32>
    %cst_144 = arith.constant dense<0.000000e+00> : vector<2x128xf32>
    %523 = tpu.matmul %518, %522, %cst_144 {dimension_numbers = #tpu.dot_dimension_numbers<[1], [0], [0], [1], [0, 0, 1, 1], [], []>} : vector<2x32xf32>, vector<32x128xf32>, vector<2x128xf32> -> vector<2x128xf32>
    %c0_145 = arith.constant 0 : index
    %c0_146 = arith.constant 0 : index
    %524 = vector.load %arg7[%c0_145, %c0_146] : memref<32x128xf32, #tpu.memory_space<vmem>>, vector<32x128xf32>
    %cst_147 = arith.constant dense<0.000000e+00> : vector<2x128xf32>
    %525 = tpu.matmul %521, %524, %cst_147 {dimension_numbers = #tpu.dot_dimension_numbers<[1], [0], [0], [1], [0, 0, 1, 1], [], []>} : vector<2x32xf32>, vector<32x128xf32>, vector<2x128xf32> -> vector<2x128xf32>
    %526 = arith.addf %523, %525 : vector<2x128xf32>
    %c0_148 = arith.constant 0 : index
    %c0_149 = arith.constant 0 : index
    %527 = vector.load %arg8[%c0_148, %c0_149] : memref<1x128xf32, #tpu.memory_space<vmem>>, vector<1x128xf32>
    %528 = vector.broadcast %527 : vector<1x128xf32> to vector<2x128xf32>
    %529 = arith.addf %526, %528 : vector<2x128xf32>
    %c0_150 = arith.constant 0 : index
    %c0_151 = arith.constant 0 : index
    %530 = vector.load %arg9[%c0_150, %c0_151] : memref<2x128xf32, #tpu.memory_space<vmem>>, vector<2x128xf32>
    tpu.vector_store %arg9[%c0_150, %c0_151], %529 {strides = array<i32>} : memref<2x128xf32, #tpu.memory_space<vmem>>, vector<2x128xf32>,
    return
  }
  func.func @transform_0(%arg0: i32) -> (i32, i32) {
    %c0_i32 = arith.constant 0 : i32
    %c0_i32_0 = arith.constant 0 : i32
    return %arg0, %c0_i32 : i32, i32
  }
  func.func @transform_1(%arg0: i32) -> (i32, i32) {
    %c0_i32 = arith.constant 0 : i32
    %c0_i32_0 = arith.constant 0 : i32
    return %arg0, %c0_i32 : i32, i32
  }
  func.func @transform_2(%arg0: i32) -> (i32, i32, i32) {
    %c0_i32 = arith.constant 0 : i32
    %c0_i32_0 = arith.constant 0 : i32
    %c0_i32_1 = arith.constant 0 : i32
    %c0_i32_2 = arith.constant 0 : i32
    return %c0_i32, %c0_i32_0, %c0_i32_1 : i32, i32, i32
  }
  func.func @transform_3(%arg0: i32) -> (i32, i32, i32) {
    %c0_i32 = arith.constant 0 : i32
    %c0_i32_0 = arith.constant 0 : i32
    %c0_i32_1 = arith.constant 0 : i32
    %c0_i32_2 = arith.constant 0 : i32
    return %c0_i32, %c0_i32_0, %c0_i32_1 : i32, i32, i32
  }
  func.func @transform_4(%arg0: i32) -> (i32, i32, i32) {
    %c0_i32 = arith.constant 0 : i32
    %c0_i32_0 = arith.constant 0 : i32
    %c0_i32_1 = arith.constant 0 : i32
    %c0_i32_2 = arith.constant 0 : i32
    return %c0_i32, %c0_i32_0, %c0_i32_1 : i32, i32, i32
  }
  func.func @transform_5(%arg0: i32) -> (i32, i32) {
    %c0_i32 = arith.constant 0 : i32
    %c0_i32_0 = arith.constant 0 : i32
    %c0_i32_1 = arith.constant 0 : i32
    return %c0_i32, %c0_i32_0 : i32, i32
  }
  func.func @transform_6(%arg0: i32) -> (i32, i32) {
    %c0_i32 = arith.constant 0 : i32
    %c0_i32_0 = arith.constant 0 : i32
    %c0_i32_1 = arith.constant 0 : i32
    return %c0_i32, %c0_i32_0 : i32, i32
  }
  func.func @transform_7(%arg0: i32) -> (i32, i32) {
    %c0_i32 = arith.constant 0 : i32
    %c0_i32_0 = arith.constant 0 : i32
    %c0_i32_1 = arith.constant 0 : i32
    return %c0_i32, %c0_i32_0 : i32, i32
  }
  func.func @transform_8(%arg0: i32) -> (i32, i32) {
    %c0_i32 = arith.constant 0 : i32
    %c0_i32_0 = arith.constant 0 : i32
    return %arg0, %c0_i32 : i32, i32
  }
}

</mosaic_0001>

<bundles_post_ra>
// kernel: lstm_forward.1
= control target key start
LH: loop header
LB: loop body
LE: loop exit
PB: predicated region body
PF: predicated region fallthrough
CT: control target
= control target key end

     0   :  { %vm43_vm0 = vcmask 261120   ;;  %v2843_v6 = vmov 0.0|0.0   ;;  %vm2844_vm1 = vmmov 0   ;;  %v2845_v11 = vmov 0.0   ;;  %s3297_s0 = inlined_call_operand.vmem [shape: f32[16,32], index: 0, kind: input, shape index: {}]   ;;  %s3298_s1 = inlined_call_operand.vmem [shape: f32[16,1], index: 1, kind: input, shape index: {}]   ;;  %s3299_s2 = inlined_call_operand.vmem [shape: f32[2,32,128], index: 2, kind: input, shape index: {}]   ;;  %s3300_s3 = inlined_call_operand.vmem [shape: f32[2,32,128], index: 3, kind: input, shape index: {}]   ;;  %s3301_s4 = inlined_call_operand.vmem [shape: f32[2,1,128], index: 4, kind: input, shape index: {}]   ;;  %s3302_s5 = inlined_call_operand.vmem [shape: f32[32,128], index: 5, kind: input, shape index: {}]   ;;  %s3303_s6 = inlined_call_operand.vmem [shape: f32[32,128], index: 6, kind: input, shape index: {}]   ;;  %s3304_s7 = inlined_call_operand.vmem [shape: f32[1,128], index: 7, kind: input, shape index: {}]   ;;  %s3305_s8 = inlined_call_operand.hbm [shape: f32[2,128], index: 8, kind: output, shape index: {}]  }
   0x1   :  { %v32_v0 = vld [vmem:[%s3299_s2] sm:$0xff]  ;;  %v33_v1 = vld [vmem:[%s3299_s2 + $0x8] sm:$0xff]  ;;  %v34_v2 = vld [vmem:[%s3299_s2 + $0x10] sm:$0xff]  ;;  %2565 = vmatprep.subr.bf16.mxu1 %v2843_v6  ;;  %2356 = vmatprep.mubr.msk.f32.mxu1 %vm2844_vm1, %v2845_v11 }
   0x2   :  { %v2557_v3 = vpack.c.bf16 %v33_v1, %v32_v0  ;;  %v35_v4 = vld [vmem:[%s3299_s2 + $0x18] sm:$0xff]  ;;  %v30_v5 = vld [vmem:[%s3297_s0] sm:$0xff]  ;;  %v128_v9 = vld [vmem:[%s3300_s3 + $0x8] sm:$0xff] }
   0x3   :  { %v2561_v7 = vpack.c.bf16 %v35_v4, %v34_v2  ;;  %2345 = vmatprep.mubr.msk.f32.mxu0 %vm43_vm0, %v30_v5  ;;  %v127_v8 = vld [vmem:[%s3300_s3] sm:$0xff]  ;;  %v129_v10 = vld [vmem:[%s3300_s3 + $0x10] sm:$0xff]  ;;  %v130_v13 = vld [vmem:[%s3300_s3 + $0x18] sm:$0xff] }
   0x4   :  { %2558 = vmatprep.subr.bf16.mxu0 %v2557_v3  ;;  %v2924_v12 = vpack.c.bf16 %v128_v9, %v127_v8 }
   0x5   :  { %13 = vsyncpa [#allocation5], 0  ;;  %2560 = vmatpush3.bf16.msra.mxu0 %v2557_v3  ;;  %v2930_v14 = vpack.c.bf16 %v130_v13, %v129_v10  ;;  %v31_v15 = vld [vmem:[%s3297_s0 + $0x8] sm:$0xff]  ;;  %v230_v16 = vld [vmem:[%s3298_s1] sm:$0x3]  ;;  %v2846_v17 = vmov 0  }
   0x6   :  { %2562 = vmatprep.subr.bf16.mxu0 %v2561_v7  ;;  %2567 = vmatpush3.bf16.msra.mxu1 %v2924_v12  ;;  %vm231_vm2 = vcmp.gt.f32.partialorder %v230_v16, 0.5  ;;  %v2187_v19 = vld [vmem:[%s3301_s4] ss:$0 sm:$0xff]  ;;  %s2847_s28 = smov 64   ;;  %s2848_s29 = smov 32   ;;  %vm243_vm4 = vcmask 254976  }
   0x7   :  { %2568 = vmatprep.subr.bf16.mxu1 %v2843_v6  ;;  %2689 = vset.pattern.permute.xlu1 %v2846_v17  ;;  %v232_v18 = vsel %vm231_vm2, 1, %v2846_v17  ;;  %v343_v48 = vld [vmem:[%s3298_s1 + $0x2] sm:$0x3]  ;;  %v455_v8 = vld [vmem:[%s3298_s1 + $0x4] sm:$0x3]  ;;  %s2849_s16 = smov 96  }
   0x8   :  { %2690 = vset.pattern.permute.xlu0 %v2846_v17  ;;  %234 = vperm.xlu1 %2689, %v232_v18   ;;  %vm344_vm5 = vcmp.gt.f32.partialorder %v343_v48, 0.5  ;;  %vm456_vm7 = vcmp.gt.f32.partialorder %v455_v8, 0.5 }
   0x9   :  { %2564 = vmatpush3.bf16.msra.mxu0 %v2561_v7  ;;  %v345_v50 = vsel %vm344_vm5, 1, %v2846_v17  ;;  %v457_v10 = vsel %vm456_vm7, 1, %v2846_v17 }
   0xa   :  { %2570 = vmatpush3.bf16.msra.mxu1 %v2930_v14  ;;  %2571 = vmatprep.subr.bf16.mxu0 %v2843_v6 }
   0xb   :  { %2577 = vmatprep.subr.bf16.mxu1 %v2843_v6 }
   0xc   :  { %2346 = vmatmul.mubr.msk.f32.vlgmr.msra.gmra.mrb[0].mxu0 %vm43_vm0, %v31_v15 }
   0xd   :  { %2357 = vmatmul.mubr.f32.vlgmr.msra.gmra.mrb[0].mxu1 %v2845_v11  ;;  %2573 = vmatpush3.bf16.msra.mxu0 %v2924_v12 }
   0xe   :  { %2574 = vmatprep.subr.bf16.mxu0 %v2843_v6  ;;  %2367 = vmatprep.mubr.msk.f32.mxu0 %vm2844_vm1, %v2845_v11 }
   0xf   :  { %2579 = vmatpush3.bf16.msra.mxu1 %v2924_v12  ;;  %2378 = vmatprep.mubr.msk.f32.mxu1 %vm2844_vm1, %v2845_v11 }
  0x10   :  { %2580 = vmatprep.subr.bf16.mxu1 %v2843_v6 }
  0x11   :  { %2576 = vmatpush3.bf16.msra.mxu0 %v2930_v14 }
  0x12   :  { %2583 = vmatprep.subr.bf16.mxu0 %v2843_v6 }
  0x13   :  { %2582 = vmatpush3.bf16.msra.mxu1 %v2930_v14 }
  0x14   :  { %2589 = vmatprep.subr.bf16.mxu1 %v2843_v6 }
  0x87   :  { %v235_v39 = vpop.permute.xlu1 %234 }
  0x88   :  { %vm236_vm3 = vcmp.eq.s32.totalorder %v235_v39, 1 }
  0xdf   :  { %v2347_v20 = vpop.f32.mrb[0].mxu0 }
  0xe0   :  { %v122_v21 = vadd.f32 %v2347_v20, %v2187_v19  ;;  %v116_v22 = vpop.f32.mrb[1].mxu0  ;;  %v201_v23 = vpop.f32.mrb[0].mxu1 }
  0xe1   :  { %v117_v24 = vadd.f32 %v2187_v19, %v116_v22  ;;  %v2358_v25 = vpop.f32.mrb[1].mxu1 }
  0xe2   :  { %126 = vst [vmem:[#allocation3 + $0x8] sm:$0xff] %v122_v21 }
  0xe3   :  { %125 = vst [vmem:[#allocation3] sm:$0xff] %v117_v24 }
  0xea   :  { %v131_v26 = vld [vmem:[#allocation3] sm:$0x3]  ;;  %v245_v44 = vld [vmem:[#allocation3 + $0x2] sm:$0x3]  ;;  %v357_v3 = vld [vmem:[#allocation3 + $0x4] sm:$0x3] }
  0xeb   :  { %v205_v27 = vadd.f32 %v201_v23, %v131_v26 }
  0xed   :  { %2691 = vtanh.f32 %v205_v27  ;;  %v2190_v29 = vmul.f32 -1.442695, %v205_v27 }
  0xef   :  { %2693 = vpow2.f32 %v2190_v29 }
  0xf7   :  { %v2692_v28 = vpop.eup %2691 }
  0xf8   :  { %215 = vrot.lane.b32.xlu0 %v2692_v28, %s2847_s28 }
  0xf9   :  { %v2694_v30 = vpop.eup %2693 }
  0xfa   :  { %v209_v31 = vadd.f32 1.0, %v2694_v30 }
  0xfc   :  { %2695 = vrcp.f32 %v209_v31  ;;  %v469_v31 = vld [vmem:[#allocation3 + $0x6] sm:$0x3] }
 0x106   :  { %v2696_v32 = vpop.eup %2695 }
 0x107   :  { %v213_v35 = vmul.f32 0.0, %v2696_v32 }
 0x16a   :  { %v216_v33 = vpop.permute.xlu0 %215 }
 0x16b   :  { %v218_v34 = vmul.f32 %v2696_v32, %v216_v33 }
 0x16d   :  { %220 = vrot.lane.b32.xlu0 %v218_v34, %s2848_s29 }
 0x1df   :  { %v221_v36 = vpop.permute.xlu0 %220 }
 0x1e0   :  { %v223_v37 = vadd.f32 %v221_v36, %v213_v35  ;;  %v567_v35 = vld [vmem:[%s3298_s1 + $0x6] sm:$0x3] }
 0x1e1   :  { %vm568_vm9 = vcmp.gt.f32.partialorder %v567_v35, 0.5 }
 0x1e2   :  { %2697 = vtanh.f32 %v223_v37  ;;  %v238_v57 = vsel %vm236_vm3, %v223_v37, 0.0  ;;  %v569_v37 = vsel %vm568_vm9, 1, %v2846_v17 }
 0x1ec   :  { %v2698_v38 = vpop.eup %2697 }
 0x1ed   :  { %226 = vrot.lane.b32.xlu1 %v2698_v38, %s2847_s28 }
 0x25f   :  { %v227_v40 = vpop.permute.xlu1 %226 }
 0x260   :  { %v229_v41 = vmul.f32 %v2696_v32, %v227_v40 }
 0x262   :  { %v237_v42 = vsel %vm236_vm3, %v229_v41, 0.0 }
 0x263   :  { %240 = vrot.lane.b32.xlu0 %v237_v42, %s2848_s29 }
 0x2d5   :  { %v241_v43 = vpop.permute.xlu0 %240 }
 0x2d6   :  { %244 = vst.msk [vmem:[#allocation2] sm:$0x3] %vm243_vm4, %v241_v43  ;;  %2368 = vmatmul.mubr.msk.f32.vlgmr.msra.gmra.mrb[2].mxu0 %vm43_vm0, %v241_v43 }
 0x2d7   :  { %2585 = vmatpush3.bf16.msra.mxu0 %v2924_v12  ;;  %2389 = vmatprep.mubr.msk.f32.mxu0 %vm2844_vm1, %v2845_v11 }
 0x2d8   :  { %2586 = vmatprep.subr.bf16.mxu0 %v2843_v6 }
 0x2db   :  { %2588 = vmatpush3.bf16.msra.mxu0 %v2930_v14 }
 0x2dc   :  { %2595 = vmatprep.subr.bf16.mxu0 %v2843_v6 }
 0x3a9   :  { %v314_v45 = vpop.f32.mrb[2].mxu0 }
 0x3aa   :  { %v318_v46 = vadd.f32 %v314_v45, %v245_v44  ;;  %v2369_v47 = vpop.f32.mrb[3].mxu0 }
 0x3ac   :  { %2699 = vtanh.f32 %v318_v46  ;;  %v2192_v51 = vmul.f32 -1.442695, %v318_v46 }
 0x3ae   :  { %2701 = vpow2.f32 %v2192_v51 }
 0x3b6   :  { %v2700_v49 = vpop.eup %2699 }
 0x3b7   :  { %328 = vrot.lane.b32.xlu1 %v2700_v49, %s2847_s28 }
 0x3b8   :  { %v2702_v52 = vpop.eup %2701 }
 0x3b9   :  { %v322_v53 = vadd.f32 1.0, %v2702_v52 }
 0x3bb   :  { %347 = vperm.xlu1 %2689, %v345_v50   ;;  %2703 = vrcp.f32 %v322_v53 }
 0x3c5   :  { %v2704_v54 = vpop.eup %2703 }
 0x3c6   :  { %v326_v58 = vmul.f32 %v2704_v54, %v238_v57 }
 0x429   :  { %v329_v55 = vpop.permute.xlu1 %328 }
 0x42a   :  { %v331_v56 = vmul.f32 %v2704_v54, %v329_v55 }
 0x42c   :  { %333 = vrot.lane.b32.xlu0 %v331_v56, %s2848_s29 }
 0x43a   :  { %v348_v62 = vpop.permute.xlu1 %347 }
 0x43b   :  { %vm349_vm6 = vcmp.eq.s32.totalorder %v348_v62, 1 }
 0x49e   :  { %v334_v59 = vpop.permute.xlu0 %333 }
 0x49f   :  { %v336_v60 = vadd.f32 %v334_v59, %v326_v58  ;;  %v679_v58 = vld [vmem:[%s3298_s1 + $0x8] sm:$0x3] }
 0x4a0   :  { %vm680_vm11 = vcmp.gt.f32.partialorder %v679_v58, 0.5 }
 0x4a1   :  { %2705 = vtanh.f32 %v336_v60  ;;  %v351_v21 = vsel %vm349_vm6, %v336_v60, %v238_v57  ;;  %v681_v60 = vsel %vm680_vm11, 1, %v2846_v17 }
 0x4ab   :  { %v2706_v61 = vpop.eup %2705 }
 0x4ac   :  { %339 = vrot.lane.b32.xlu0 %v2706_v61, %s2847_s28 }
 0x51e   :  { %v340_v63 = vpop.permute.xlu0 %339 }
 0x51f   :  { %v342_v0 = vmul.f32 %v2704_v54, %v340_v63  ;;  %v581_v54 = vld [vmem:[#allocation3 + $0x8] sm:$0x3] }
 0x521   :  { %v350_v1 = vsel %vm349_vm6, %v342_v0, %v237_v42 }
 0x522   :  { %353 = vrot.lane.b32.xlu1 %v350_v1, %s2848_s29 }
 0x594   :  { %v354_v2 = vpop.permute.xlu1 %353 }
 0x595   :  { %356 = vst.msk [vmem:[#allocation2 + $0x2] sm:$0x3] %vm243_vm4, %v354_v2  ;;  %2379 = vmatmul.mubr.msk.f32.vlgmr.msra.gmra.mrb[2].mxu1 %vm43_vm0, %v354_v2 }
 0x596   :  { %2591 = vmatpush3.bf16.msra.mxu1 %v2924_v12  ;;  %2400 = vmatprep.mubr.msk.f32.mxu1 %vm2844_vm1, %v2845_v11 }
 0x597   :  { %2592 = vmatprep.subr.bf16.mxu1 %v2843_v6 }
 0x59a   :  { %2594 = vmatpush3.bf16.msra.mxu1 %v2930_v14 }
 0x59b   :  { %2601 = vmatprep.subr.bf16.mxu1 %v2843_v6 }
 0x668   :  { %v426_v4 = vpop.f32.mrb[2].mxu1 }
 0x669   :  { %v430_v5 = vadd.f32 %v426_v4, %v357_v3  ;;  %v2380_v7 = vpop.f32.mrb[3].mxu1 }
 0x66b   :  { %2707 = vtanh.f32 %v430_v5  ;;  %v2194_v13 = vmul.f32 -1.442695, %v430_v5 }
 0x66d   :  { %2709 = vpow2.f32 %v2194_v13 }
 0x675   :  { %v2708_v9 = vpop.eup %2707 }
 0x676   :  { %440 = vrot.lane.b32.xlu0 %v2708_v9, %s2847_s28 }
 0x677   :  { %v2710_v15 = vpop.eup %2709 }
 0x678   :  { %v434_v16 = vadd.f32 1.0, %v2710_v15 }
 0x67a   :  { %459 = vperm.xlu0 %2690, %v457_v10   ;;  %2711 = vrcp.f32 %v434_v16 }
 0x684   :  { %v2712_v18 = vpop.eup %2711 }
 0x685   :  { %v438_v22 = vmul.f32 %v2712_v18, %v351_v21 }
 0x6e8   :  { %v441_v19 = vpop.permute.xlu0 %440 }
 0x6e9   :  { %v443_v20 = vmul.f32 %v2712_v18, %v441_v19 }
 0x6eb   :  { %445 = vrot.lane.b32.xlu1 %v443_v20, %s2848_s29 }
 0x6f9   :  { %v460_v26 = vpop.permute.xlu0 %459 }
 0x6fa   :  { %vm461_vm8 = vcmp.eq.s32.totalorder %v460_v26, 1 }
 0x75d   :  { %v446_v23 = vpop.permute.xlu1 %445 }
 0x75e   :  { %v448_v24 = vadd.f32 %v446_v23, %v438_v22  ;;  %v791_v22 = vld [vmem:[%s3298_s1 + $0xa] sm:$0x3] }
 0x75f   :  { %vm792_vm13 = vcmp.gt.f32.partialorder %v791_v22, 0.5  ;;  %v2205_v22 = vld [vmem:[%s3299_s2 + $0x20] sm:$0xff] }
 0x760   :  { %2713 = vtanh.f32 %v448_v24  ;;  %v463_v44 = vsel %vm461_vm8, %v448_v24, %v351_v21  ;;  %v793_v23 = vsel %vm792_vm13, 1, %v2846_v17 }
 0x76a   :  { %v2714_v25 = vpop.eup %2713 }
 0x76b   :  { %451 = vrot.lane.b32.xlu1 %v2714_v25, %s2847_s28 }
 0x7dd   :  { %v452_v27 = vpop.permute.xlu1 %451 }
 0x7de   :  { %v454_v28 = vmul.f32 %v2712_v18, %v452_v27  ;;  %v693_v18 = vld [vmem:[#allocation3 + $0xa] sm:$0x3] }
 0x7e0   :  { %v462_v29 = vsel %vm461_vm8, %v454_v28, %v350_v1 }
 0x7e1   :  { %465 = vrot.lane.b32.xlu1 %v462_v29, %s2848_s29 }
 0x853   :  { %v466_v30 = vpop.permute.xlu1 %465 }
 0x854   :  { %468 = vst.msk [vmem:[#allocation2 + $0x4] sm:$0x3] %vm243_vm4, %v466_v30  ;;  %2390 = vmatmul.mubr.msk.f32.vlgmr.msra.gmra.mrb[4].mxu0 %vm43_vm0, %v466_v30 }
 0x855   :  { %2597 = vmatpush3.bf16.msra.mxu0 %v2924_v12  ;;  %2411 = vmatprep.mubr.msk.f32.mxu0 %vm2844_vm1, %v2845_v11 }
 0x856   :  { %2598 = vmatprep.subr.bf16.mxu0 %v2843_v6 }
 0x859   :  { %2600 = vmatpush3.bf16.msra.mxu0 %v2930_v14 }
 0x85a   :  { %2607 = vmatprep.subr.bf16.mxu0 %v2843_v6 }
 0x927   :  { %v538_v32 = vpop.f32.mrb[4].mxu0 }
 0x928   :  { %v542_v33 = vadd.f32 %v538_v32, %v469_v31  ;;  %v2391_v34 = vpop.f32.mrb[5].mxu0 }
 0x92a   :  { %2715 = vtanh.f32 %v542_v33  ;;  %v2196_v38 = vmul.f32 -1.442695, %v542_v33 }
 0x92c   :  { %2717 = vpow2.f32 %v2196_v38 }
 0x934   :  { %v2716_v36 = vpop.eup %2715 }
 0x935   :  { %552 = vrot.lane.b32.xlu0 %v2716_v36, %s2847_s28 }
 0x936   :  { %v2718_v39 = vpop.eup %2717 }
 0x937   :  { %v546_v40 = vadd.f32 1.0, %v2718_v39 }
 0x939   :  { %571 = vperm.xlu0 %2690, %v569_v37   ;;  %2719 = vrcp.f32 %v546_v40  ;;  %v805_v40 = vld [vmem:[#allocation3 + $0xc] sm:$0x3] }
 0x943   :  { %v2720_v41 = vpop.eup %2719 }
 0x944   :  { %v550_v45 = vmul.f32 %v2720_v41, %v463_v44 }
 0x9a7   :  { %v553_v42 = vpop.permute.xlu0 %552 }
 0x9a8   :  { %v555_v43 = vmul.f32 %v2720_v41, %v553_v42 }
 0x9aa   :  { %557 = vrot.lane.b32.xlu1 %v555_v43, %s2848_s29 }
 0x9b8   :  { %v572_v49 = vpop.permute.xlu0 %571 }
 0x9b9   :  { %vm573_vm10 = vcmp.eq.s32.totalorder %v572_v49, 1 }
 0xa1c   :  { %v558_v46 = vpop.permute.xlu1 %557 }
 0xa1d   :  { %v560_v47 = vadd.f32 %v558_v46, %v550_v45 }
 0xa1f   :  { %2721 = vtanh.f32 %v560_v47  ;;  %v575_v3 = vsel %vm573_vm10, %v560_v47, %v463_v44  ;;  %v903_v44 = vld [vmem:[%s3298_s1 + $0xc] sm:$0x3] }
 0xa20   :  { %vm904_vm15 = vcmp.gt.f32.partialorder %v903_v44, 0.5 }
 0xa21   :  { %v905_v46 = vsel %vm904_vm15, 1, %v2846_v17 }
 0xa29   :  { %v2722_v48 = vpop.eup %2721 }
 0xa2a   :  { %563 = vrot.lane.b32.xlu1 %v2722_v48, %s2847_s28 }
 0xa9c   :  { %v564_v50 = vpop.permute.xlu1 %563 }
 0xa9d   :  { %v566_v51 = vmul.f32 %v2720_v41, %v564_v50 }
 0xa9f   :  { %v574_v52 = vsel %vm573_vm10, %v566_v51, %v462_v29 }
 0xaa0   :  { %577 = vrot.lane.b32.xlu0 %v574_v52, %s2848_s29 }
 0xb12   :  { %v578_v53 = vpop.permute.xlu0 %577 }
 0xb13   :  { %580 = vst.msk [vmem:[#allocation2 + $0x6] sm:$0x3] %vm243_vm4, %v578_v53  ;;  %2401 = vmatmul.mubr.msk.f32.vlgmr.msra.gmra.mrb[4].mxu1 %vm43_vm0, %v578_v53 }
 0xb14   :  { %2603 = vmatpush3.bf16.msra.mxu1 %v2924_v12  ;;  %2422 = vmatprep.mubr.msk.f32.mxu1 %vm2844_vm1, %v2845_v11 }
 0xb15   :  { %2604 = vmatprep.subr.bf16.mxu1 %v2843_v6 }
 0xb18   :  { %2606 = vmatpush3.bf16.msra.mxu1 %v2930_v14 }
 0xb1a   :  { %v1028_v39 = vld [vmem:[#allocation2] sm:$0xff] }
 0xbe6   :  { %v650_v55 = vpop.f32.mrb[4].mxu1 }
 0xbe7   :  { %v654_v56 = vadd.f32 %v650_v55, %v581_v54  ;;  %v2402_v57 = vpop.f32.mrb[5].mxu1 }
 0xbe9   :  { %2723 = vtanh.f32 %v654_v56  ;;  %v2198_v61 = vmul.f32 -1.442695, %v654_v56 }
 0xbeb   :  { %2725 = vpow2.f32 %v2198_v61 }
 0xbf3   :  { %v2724_v59 = vpop.eup %2723 }
 0xbf4   :  { %664 = vrot.lane.b32.xlu1 %v2724_v59, %s2847_s28 }
 0xbf5   :  { %v2726_v62 = vpop.eup %2725 }
 0xbf6   :  { %v658_v63 = vadd.f32 1.0, %v2726_v62 }
 0xbf8   :  { %683 = vperm.xlu1 %2689, %v681_v60   ;;  %2727 = vrcp.f32 %v658_v63  ;;  %v917_v63 = vld [vmem:[#allocation3 + $0xe] sm:$0x3] }
 0xc02   :  { %v2728_v0 = vpop.eup %2727 }
 0xc03   :  { %v662_v4 = vmul.f32 %v2728_v0, %v575_v3 }
 0xc66   :  { %v665_v1 = vpop.permute.xlu1 %664 }
 0xc67   :  { %v667_v2 = vmul.f32 %v2728_v0, %v665_v1 }
 0xc69   :  { %669 = vrot.lane.b32.xlu0 %v667_v2, %s2848_s29 }
 0xc77   :  { %v684_v9 = vpop.permute.xlu1 %683 }
 0xc78   :  { %vm685_vm12 = vcmp.eq.s32.totalorder %v684_v9, 1 }
 0xcdb   :  { %v670_v5 = vpop.permute.xlu0 %669 }
 0xcdc   :  { %v672_v7 = vadd.f32 %v670_v5, %v662_v4 }
 0xcde   :  { %2729 = vtanh.f32 %v672_v7  ;;  %v687_v29 = vsel %vm685_vm12, %v672_v7, %v575_v3  ;;  %v1015_v3 = vld [vmem:[%s3298_s1 + $0xe] sm:$0x3] }
 0xcdf   :  { %vm1016_vm3 = vcmp.gt.f32.partialorder %v1015_v3, 0.5 }
 0xce0   :  { %v1017_v5 = vsel %vm1016_vm3, 1, %v2846_v17 }
 0xce8   :  { %v2730_v8 = vpop.eup %2729 }
 0xce9   :  { %675 = vrot.lane.b32.xlu0 %v2730_v8, %s2847_s28 }
 0xd5b   :  { %v676_v10 = vpop.permute.xlu0 %675 }
 0xd5c   :  { %v678_v13 = vmul.f32 %v2728_v0, %v676_v10 }
 0xd5e   :  { %v686_v15 = vsel %vm685_vm12, %v678_v13, %v574_v52 }
 0xd5f   :  { %689 = vrot.lane.b32.xlu1 %v686_v15, %s2848_s29 }
 0xdd1   :  { %v690_v16 = vpop.permute.xlu1 %689 }
 0xdd2   :  { %692 = vst.msk [vmem:[#allocation2 + $0x8] sm:$0x3] %vm243_vm4, %v690_v16  ;;  %2412 = vmatmul.mubr.msk.f32.vlgmr.msra.gmra.mrb[6].mxu0 %vm43_vm0, %v690_v16 }
 0xdd3   :  { %2609 = vmatpush3.bf16.msra.mxu0 %v2924_v12  ;;  %2433 = vmatprep.mubr.msk.f32.mxu0 %vm2844_vm1, %v2845_v11 }
 0xdd4   :  { %2610 = vmatprep.subr.bf16.mxu0 %v2843_v6 }
 0xdd7   :  { %2612 = vmatpush3.bf16.msra.mxu0 %v2930_v14 }
 0xdd8   :  { %2621 = vmatprep.subr.bf16.mxu0 %v2843_v6 }
 0xea5   :  { %v762_v19 = vpop.f32.mrb[6].mxu0 }
 0xea6   :  { %v766_v20 = vadd.f32 %v762_v19, %v693_v18  ;;  %v2413_v21 = vpop.f32.mrb[7].mxu0 }
 0xea8   :  { %2731 = vtanh.f32 %v766_v20  ;;  %v2200_v24 = vmul.f32 -1.442695, %v766_v20 }
 0xeaa   :  { %2733 = vpow2.f32 %v2200_v24  ;;  %v2207_v24 = vld [vmem:[%s3299_s2 + $0x30] sm:$0xff] }
 0xeb2   :  { %v2732_v12 = vpop.eup %2731 }
 0xeb3   :  { %776 = vrot.lane.b32.xlu0 %v2732_v12, %s2847_s28  ;;  %v2206_v12 = vld [vmem:[%s3299_s2 + $0x28] sm:$0xff] }
 0xeb4   :  { %v2734_v14 = vpop.eup %2733 }
 0xeb5   :  { %v770_v25 = vadd.f32 1.0, %v2734_v14  ;;  %v2208_v14 = vld [vmem:[%s3299_s2 + $0x38] sm:$0xff] }
 0xeb7   :  { %795 = vperm.xlu0 %2690, %v793_v23   ;;  %2735 = vrcp.f32 %v770_v25  ;;  %v2613_v23 = vpack.c.bf16 %v2206_v12, %v2205_v22  ;;  %v2617_v25 = vpack.c.bf16 %v2208_v14, %v2207_v24 }
 0xeb9   :  { %2614 = vmatprep.subr.bf16.mxu1 %v2613_v23 }
 0xec1   :  { %v2736_v26 = vpop.eup %2735 }
 0xec2   :  { %v774_v30 = vmul.f32 %v2736_v26, %v687_v29 }
 0xf25   :  { %v777_v27 = vpop.permute.xlu0 %776 }
 0xf26   :  { %v779_v28 = vmul.f32 %v2736_v26, %v777_v27  ;;  %v2213_v27 = vld [vmem:[%s3300_s3 + $0x20] sm:$0xff] }
 0xf28   :  { %781 = vrot.lane.b32.xlu1 %v779_v28, %s2848_s29  ;;  %v2214_v28 = vld [vmem:[%s3300_s3 + $0x28] sm:$0xff] }
 0xf36   :  { %v796_v34 = vpop.permute.xlu0 %795 }
 0xf37   :  { %vm797_vm14 = vcmp.eq.s32.totalorder %v796_v34, 1 }
 0xf9a   :  { %v782_v31 = vpop.permute.xlu1 %781 }
 0xf9b   :  { %v784_v32 = vadd.f32 %v782_v31, %v774_v30  ;;  %v3103_v31 = vpack.c.bf16 %v2214_v28, %v2213_v27 }
 0xf9d   :  { %2737 = vtanh.f32 %v784_v32  ;;  %v799_v53 = vsel %vm797_vm14, %v784_v32, %v687_v29  ;;  %v2215_v29 = vld [vmem:[%s3300_s3 + $0x30] sm:$0xff]  ;;  %v2216_v32 = vld [vmem:[%s3300_s3 + $0x38] sm:$0xff] }
 0xf9e   :  { %v3109_v34 = vpack.c.bf16 %v2216_v32, %v2215_v29  ;;  %v1447_v32 = vld [vmem:[%s3298_s1 + $0x4] sm:$0x3] }
 0xf9f   :  { %vm1448_vm9 = vcmp.gt.f32.partialorder %v1447_v32, 0.5 }
 0xfa7   :  { %v2738_v33 = vpop.eup %2737 }
 0xfa8   :  { %787 = vrot.lane.b32.xlu1 %v2738_v33, %s2847_s28 }
0x101a   :  { %v788_v35 = vpop.permute.xlu1 %787 }
0x101b   :  { %v790_v36 = vmul.f32 %v2736_v26, %v788_v35 }
0x101d   :  { %v798_v37 = vsel %vm797_vm14, %v790_v36, %v686_v15 }
0x101e   :  { %801 = vrot.lane.b32.xlu0 %v798_v37, %s2848_s29 }
0x1090   :  { %v802_v38 = vpop.permute.xlu0 %801 }
0x1091   :  { %804 = vst.msk [vmem:[#allocation2 + $0xa] sm:$0x3] %vm243_vm4, %v802_v38  ;;  %2423 = vmatmul.mubr.msk.f32.vlgmr.msra.gmra.mrb[6].mxu1 %vm43_vm0, %v802_v38 }
0x1092   :  { %2444 = vmatprep.mubr.msk.f32.mxu1 %vm43_vm0, %v1028_v39  ;;  %2616 = vmatpush3.bf16.msra.mxu1 %v2613_v23 }
0x1093   :  { %2618 = vmatprep.subr.bf16.mxu1 %v2617_v25 }
0x1096   :  { %2620 = vmatpush3.bf16.msra.mxu1 %v2617_v25 }
0x1097   :  { %2627 = vmatprep.subr.bf16.mxu1 %v2843_v6 }
0x1164   :  { %v874_v41 = vpop.f32.mrb[6].mxu1 }
0x1165   :  { %v878_v42 = vadd.f32 %v874_v41, %v805_v40  ;;  %v2424_v43 = vpop.f32.mrb[7].mxu1  ;;  %v2210_v40 = vld [vmem:[%s3301_s4 + $0x1] ss:$0 sm:$0xff] }
0x1167   :  { %2739 = vtanh.f32 %v878_v42  ;;  %v2202_v47 = vmul.f32 -1.442695, %v878_v42 }
0x1169   :  { %2741 = vpow2.f32 %v2202_v47  ;;  %v1227_v47 = vld [vmem:[%s3298_s1] sm:$0x3] }
0x1171   :  { %v2740_v45 = vpop.eup %2739 }
0x1172   :  { %888 = vrot.lane.b32.xlu1 %v2740_v45, %s2847_s28 }
0x1173   :  { %v2742_v48 = vpop.eup %2741 }
0x1174   :  { %v882_v49 = vadd.f32 1.0, %v2742_v48 }
0x1176   :  { %907 = vperm.xlu1 %2689, %v905_v46   ;;  %2743 = vrcp.f32 %v882_v49 }
0x1180   :  { %v2744_v50 = vpop.eup %2743 }
0x1181   :  { %v886_v54 = vmul.f32 %v2744_v50, %v799_v53 }
0x11e4   :  { %v889_v51 = vpop.permute.xlu1 %888 }
0x11e5   :  { %v891_v52 = vmul.f32 %v2744_v50, %v889_v51 }
0x11e7   :  { %893 = vrot.lane.b32.xlu0 %v891_v52, %s2848_s29 }
0x11f5   :  { %v908_v58 = vpop.permute.xlu1 %907 }
0x11f6   :  { %vm909_vm2 = vcmp.eq.s32.totalorder %v908_v58, 1 }
0x1259   :  { %v894_v55 = vpop.permute.xlu0 %893 }
0x125a   :  { %v896_v56 = vadd.f32 %v894_v55, %v886_v54 }
0x125c   :  { %2745 = vtanh.f32 %v896_v56  ;;  %v911_v16 = vsel %vm909_vm2, %v896_v56, %v799_v53 }
0x1266   :  { %v2746_v57 = vpop.eup %2745 }
0x1267   :  { %899 = vrot.lane.b32.xlu0 %v2746_v57, %s2847_s28 }
0x12d9   :  { %v900_v59 = vpop.permute.xlu0 %899 }
0x12da   :  { %v902_v60 = vmul.f32 %v2744_v50, %v900_v59 }
0x12dc   :  { %v910_v61 = vsel %vm909_vm2, %v902_v60, %v798_v37 }
0x12dd   :  { %913 = vrot.lane.b32.xlu1 %v910_v61, %s2848_s29 }
0x134f   :  { %v914_v62 = vpop.permute.xlu1 %913 }
0x1350   :  { %916 = vst.msk [vmem:[#allocation2 + $0xc] sm:$0x3] %vm243_vm4, %v914_v62  ;;  %2434 = vmatmul.mubr.msk.f32.vlgmr.msra.gmra.mrb[8].mxu0 %vm43_vm0, %v914_v62 }
0x1351   :  { %2455 = vmatprep.mubr.msk.f32.mxu0 %vm2844_vm1, %v2845_v11  ;;  %2623 = vmatpush3.bf16.msra.mxu0 %v3103_v31 }
0x1352   :  { %2624 = vmatprep.subr.bf16.mxu0 %v2843_v6 }
0x1355   :  { %2626 = vmatpush3.bf16.msra.mxu0 %v3109_v34 }
0x1356   :  { %2633 = vmatprep.subr.bf16.mxu0 %v2843_v6 }
0x1358   :  { %2456 = vmatmul.mubr.f32.vlgmr.msra.gmra.mrb[10].mxu0 %v2845_v11 }
0x1359   :  { %2635 = vmatpush3.bf16.msra.mxu0 %v3103_v31  ;;  %2477 = vmatprep.mubr.msk.f32.mxu0 %vm2844_vm1, %v2845_v11 }
0x135a   :  { %2636 = vmatprep.subr.bf16.mxu0 %v2843_v6 }
0x135d   :  { %2638 = vmatpush3.bf16.msra.mxu0 %v3109_v34 }
0x135e   :  { %2645 = vmatprep.subr.bf16.mxu0 %v2843_v6 }
0x1423   :  { %v986_v0 = vpop.f32.mrb[8].mxu0 }
0x1424   :  { %v990_v1 = vadd.f32 %v986_v0, %v917_v63  ;;  %v2435_v2 = vpop.f32.mrb[9].mxu0 }
0x1426   :  { %2747 = vtanh.f32 %v990_v1  ;;  %v2204_v7 = vmul.f32 -1.442695, %v990_v1 }
0x1428   :  { %2749 = vpow2.f32 %v2204_v7 }
0x142b   :  { %v1198_v38 = vpop.f32.mrb[10].mxu0 }
0x142c   :  { %v2457_v39 = vpop.f32.mrb[11].mxu0 }
0x1430   :  { %v2748_v4 = vpop.eup %2747 }
0x1431   :  { %1000 = vrot.lane.b32.xlu0 %v2748_v4, %s2847_s28 }
0x1432   :  { %v2750_v8 = vpop.eup %2749 }
0x1433   :  { %v994_v9 = vadd.f32 1.0, %v2750_v8 }
0x1435   :  { %1019 = vperm.xlu0 %2690, %v1017_v5   ;;  %2751 = vrcp.f32 %v994_v9  ;;  %v1337_v5 = vld [vmem:[%s3298_s1 + $0x2] sm:$0x3] }
0x1436   :  { %vm1338_vm7 = vcmp.gt.f32.partialorder %v1337_v5, 0.5 }
0x1437   :  { %v1339_v8 = vsel %vm1338_vm7, 1, %v2846_v17 }
0x143f   :  { %v2752_v10 = vpop.eup %2751 }
0x1440   :  { %v998_v18 = vmul.f32 %v2752_v10, %v911_v16 }
0x14a3   :  { %v1001_v13 = vpop.permute.xlu0 %1000 }
0x14a4   :  { %v1003_v15 = vmul.f32 %v2752_v10, %v1001_v13 }
0x14a6   :  { %1005 = vrot.lane.b32.xlu1 %v1003_v15, %s2848_s29 }
0x14b4   :  { %v1020_v26 = vpop.permute.xlu0 %1019 }
0x14b5   :  { %vm1021_vm5 = vcmp.eq.s32.totalorder %v1020_v26, 1 }
0x1518   :  { %v1006_v19 = vpop.permute.xlu1 %1005 }
0x1519   :  { %v1008_v20 = vadd.f32 %v1006_v19, %v998_v18 }
0x151b   :  { %2753 = vtanh.f32 %v1008_v20 }
0x1525   :  { %v2754_v21 = vpop.eup %2753 }
0x1526   :  { %1011 = vrot.lane.b32.xlu1 %v2754_v21, %s2847_s28 }
0x1598   :  { %v1012_v30 = vpop.permute.xlu1 %1011 }
0x1599   :  { %v1014_v33 = vmul.f32 %v2752_v10, %v1012_v30 }
0x159b   :  { %v1022_v35 = vsel %vm1021_vm5, %v1014_v33, %v910_v61 }
0x159c   :  { %1024 = vrot.lane.b32.xlu0 %v1022_v35, %s2848_s29  ;;  %v1449_v35 = vsel %vm1448_vm9, 1, %v2846_v17 }
0x160e   :  { %v1025_v36 = vpop.permute.xlu0 %1024 }
0x160f   :  { %1027 = vst.msk [vmem:[#allocation2 + $0xe] sm:$0x3] %vm243_vm4, %v1025_v36  ;;  %vm1228_vm4 = vcmp.gt.f32.partialorder %v1227_v47, 0.5 }
0x1610   :  { %v1229_v49 = vsel %vm1228_vm4, 1, %v2846_v17 }
0x1616   :  { %v1029_v37 = vld [vmem:[#allocation2 + $0x8] sm:$0xff] }
0x1617   :  { %2445 = vmatmul.mubr.msk.f32.vlgmr.msra.gmra.mrb[8].mxu1 %vm43_vm0, %v1029_v37 }
0x1618   :  { %2629 = vmatpush3.bf16.msra.mxu1 %v3103_v31  ;;  %2466 = vmatprep.mubr.msk.f32.mxu1 %vm2844_vm1, %v2845_v11 }
0x1619   :  { %2630 = vmatprep.subr.bf16.mxu1 %v2843_v6 }
0x161c   :  { %2632 = vmatpush3.bf16.msra.mxu1 %v3109_v34 }
0x161d   :  { %2639 = vmatprep.subr.bf16.mxu1 %v2843_v6 }
0x16ea   :  { %v2446_v41 = vpop.f32.mrb[8].mxu1 }
0x16eb   :  { %v1121_v42 = vadd.f32 %v2446_v41, %v2210_v40  ;;  %v1115_v43 = vpop.f32.mrb[9].mxu1 }
0x16ec   :  { %v1116_v44 = vadd.f32 %v2210_v40, %v1115_v43 }
0x16ed   :  { %1125 = vst [vmem:[#allocation3 + $0x8] sm:$0xff] %v1121_v42 }
0x16ee   :  { %1124 = vst [vmem:[#allocation3] sm:$0xff] %v1116_v44 }
0x16f5   :  { %v1131_v45 = vld [vmem:[#allocation3] sm:$0x3]  ;;  %v1236_v1 = vld [vmem:[#allocation3 + $0x2] sm:$0x3]  ;;  %v1346_v27 = vld [vmem:[#allocation3 + $0x4] sm:$0x3] }
0x16f6   :  { %v1202_v46 = vadd.f32 %v1198_v38, %v1131_v45 }
0x16f8   :  { %2755 = vtanh.f32 %v1202_v46  ;;  %v2217_v50 = vmul.f32 -1.442695, %v1202_v46 }
0x16fa   :  { %2757 = vpow2.f32 %v2217_v50 }
0x1702   :  { %v2756_v48 = vpop.eup %2755 }
0x1703   :  { %1212 = vrot.lane.b32.xlu1 %v2756_v48, %s2847_s28 }
0x1704   :  { %v2758_v51 = vpop.eup %2757 }
0x1705   :  { %v1206_v52 = vadd.f32 1.0, %v2758_v51 }
0x1707   :  { %1231 = vperm.xlu1 %2689, %v1229_v49   ;;  %2759 = vrcp.f32 %v1206_v52  ;;  %v1456_v52 = vld [vmem:[#allocation3 + $0x6] sm:$0x3] }
0x1711   :  { %v2760_v53 = vpop.eup %2759 }
0x1712   :  { %v1210_v56 = vmul.f32 0.0, %v2760_v53 }
0x1775   :  { %v1213_v54 = vpop.permute.xlu1 %1212 }
0x1776   :  { %v1215_v55 = vmul.f32 %v2760_v53, %v1213_v54 }
0x1778   :  { %1217 = vrot.lane.b32.xlu0 %v1215_v55, %s2848_s29 }
0x1786   :  { %v1232_v60 = vpop.permute.xlu1 %1231 }
0x1787   :  { %vm1233_vm6 = vcmp.eq.s32.totalorder %v1232_v60, 1 }
0x17ea   :  { %v1218_v57 = vpop.permute.xlu0 %1217 }
0x17eb   :  { %v1220_v58 = vadd.f32 %v1218_v57, %v1210_v56  ;;  %v1557_v56 = vld [vmem:[%s3298_s1 + $0x6] sm:$0x3] }
0x17ec   :  { %vm1558_vm11 = vcmp.gt.f32.partialorder %v1557_v56, 0.5 }
0x17ed   :  { %2761 = vtanh.f32 %v1220_v58  ;;  %v1235_v19 = vsel %vm1233_vm6, %v1220_v58, 0.0  ;;  %v1559_v58 = vsel %vm1558_vm11, 1, %v2846_v17 }
0x17f7   :  { %v2762_v59 = vpop.eup %2761 }
0x17f8   :  { %1223 = vrot.lane.b32.xlu0 %v2762_v59, %s2847_s28 }
0x186a   :  { %v1224_v61 = vpop.permute.xlu0 %1223 }
0x186b   :  { %v1226_v62 = vmul.f32 %v2760_v53, %v1224_v61 }
0x186d   :  { %v1234_v63 = vsel %vm1233_vm6, %v1226_v62, 0.0 }
0x186e   :  { %1238 = vrot.lane.b32.xlu1 %v1234_v63, %s2848_s29 }
0x18e0   :  { %v1239_v0 = vpop.permute.xlu1 %1238 }
0x18e1   :  { %2467 = vmatmul.mubr.msk.f32.vlgmr.msra.gmra.mrb[10].mxu1 %vm43_vm0, %v1239_v0 }
0x18e2   :  { %2641 = vmatpush3.bf16.msra.mxu1 %v3103_v31  ;;  %2488 = vmatprep.mubr.msk.f32.mxu1 %vm2844_vm1, %v2845_v11 }
0x18e3   :  { %2642 = vmatprep.subr.bf16.mxu1 %v2843_v6 }
0x18e6   :  { %2644 = vmatpush3.bf16.msra.mxu1 %v3109_v34 }
0x18e7   :  { %2651 = vmatprep.subr.bf16.mxu1 %v2843_v6 }
0x19b4   :  { %v1308_v2 = vpop.f32.mrb[10].mxu1 }
0x19b5   :  { %v1312_v3 = vadd.f32 %v1308_v2, %v1236_v1  ;;  %v2468_v4 = vpop.f32.mrb[11].mxu1 }
0x19b7   :  { %2763 = vtanh.f32 %v1312_v3  ;;  %v2219_v9 = vmul.f32 -1.442695, %v1312_v3 }
0x19b9   :  { %2765 = vpow2.f32 %v2219_v9 }
0x19c1   :  { %v2764_v7 = vpop.eup %2763 }
0x19c2   :  { %1322 = vrot.lane.b32.xlu0 %v2764_v7, %s2847_s28 }
0x19c3   :  { %v2766_v10 = vpop.eup %2765 }
0x19c4   :  { %v1316_v13 = vadd.f32 1.0, %v2766_v10 }
0x19c6   :  { %1341 = vperm.xlu0 %2690, %v1339_v8   ;;  %2767 = vrcp.f32 %v1316_v13 }
0x19d0   :  { %v2768_v15 = vpop.eup %2767 }
0x19d1   :  { %v1320_v20 = vmul.f32 %v2768_v15, %v1235_v19 }
0x1a34   :  { %v1323_v16 = vpop.permute.xlu0 %1322 }
0x1a35   :  { %v1325_v18 = vmul.f32 %v2768_v15, %v1323_v16 }
0x1a37   :  { %1327 = vrot.lane.b32.xlu1 %v1325_v18, %s2848_s29 }
0x1a45   :  { %v1342_v23 = vpop.permute.xlu0 %1341 }
0x1a46   :  { %vm1343_vm8 = vcmp.eq.s32.totalorder %v1342_v23, 1 }
0x1aa9   :  { %v1328_v21 = vpop.permute.xlu1 %1327 }
0x1aaa   :  { %v1330_v22 = vadd.f32 %v1328_v21, %v1320_v20  ;;  %v1667_v20 = vld [vmem:[%s3298_s1 + $0x8] sm:$0x3] }
0x1aab   :  { %vm1668_vm13 = vcmp.gt.f32.partialorder %v1667_v20, 0.5 }
0x1aac   :  { %2769 = vtanh.f32 %v1330_v22  ;;  %v1345_v42 = vsel %vm1343_vm8, %v1330_v22, %v1235_v19  ;;  %v1669_v22 = vsel %vm1668_vm13, 1, %v2846_v17 }
0x1ab6   :  { %v2770_v12 = vpop.eup %2769 }
0x1ab7   :  { %1333 = vrot.lane.b32.xlu1 %v2770_v12, %s2847_s28 }
0x1b29   :  { %v1334_v24 = vpop.permute.xlu1 %1333 }
0x1b2a   :  { %v1336_v14 = vmul.f32 %v2768_v15, %v1334_v24  ;;  %v1566_v15 = vld [vmem:[#allocation3 + $0x8] sm:$0x3] }
0x1b2c   :  { %v1344_v25 = vsel %vm1343_vm8, %v1336_v14, %v1234_v63 }
0x1b2d   :  { %1348 = vrot.lane.b32.xlu0 %v1344_v25, %s2848_s29 }
0x1b9f   :  { %v1349_v26 = vpop.permute.xlu0 %1348 }
0x1ba0   :  { %2478 = vmatmul.mubr.msk.f32.vlgmr.msra.gmra.mrb[12].mxu0 %vm43_vm0, %v1349_v26 }
0x1ba1   :  { %2647 = vmatpush3.bf16.msra.mxu0 %v3103_v31  ;;  %2499 = vmatprep.mubr.msk.f32.mxu0 %vm2844_vm1, %v2845_v11 }
0x1ba2   :  { %2648 = vmatprep.subr.bf16.mxu0 %v2843_v6 }
0x1ba5   :  { %2650 = vmatpush3.bf16.msra.mxu0 %v3109_v34 }
0x1ba6   :  { %2657 = vmatprep.subr.bf16.mxu0 %v2843_v6 }
0x1c73   :  { %v1418_v28 = vpop.f32.mrb[12].mxu0 }
0x1c74   :  { %v1422_v29 = vadd.f32 %v1418_v28, %v1346_v27  ;;  %v2479_v30 = vpop.f32.mrb[13].mxu0 }
0x1c76   :  { %2771 = vtanh.f32 %v1422_v29  ;;  %v2221_v36 = vmul.f32 -1.442695, %v1422_v29 }
0x1c78   :  { %2773 = vpow2.f32 %v2221_v36 }
0x1c80   :  { %v2772_v33 = vpop.eup %2771 }
0x1c81   :  { %1432 = vrot.lane.b32.xlu1 %v2772_v33, %s2847_s28 }
0x1c82   :  { %v2774_v37 = vpop.eup %2773 }
0x1c83   :  { %v1426_v38 = vadd.f32 1.0, %v2774_v37 }
0x1c85   :  { %1451 = vperm.xlu1 %2689, %v1449_v35   ;;  %2775 = vrcp.f32 %v1426_v38 }
0x1c8f   :  { %v2776_v39 = vpop.eup %2775 }
0x1c90   :  { %v1430_v43 = vmul.f32 %v2776_v39, %v1345_v42 }
0x1cf3   :  { %v1433_v40 = vpop.permute.xlu1 %1432 }
0x1cf4   :  { %v1435_v41 = vmul.f32 %v2776_v39, %v1433_v40 }
0x1cf6   :  { %1437 = vrot.lane.b32.xlu0 %v1435_v41, %s2848_s29 }
0x1d04   :  { %v1452_v47 = vpop.permute.xlu1 %1451 }
0x1d05   :  { %vm1453_vm10 = vcmp.eq.s32.totalorder %v1452_v47, 1 }
0x1d68   :  { %v1438_v44 = vpop.permute.xlu0 %1437 }
0x1d69   :  { %v1440_v45 = vadd.f32 %v1438_v44, %v1430_v43  ;;  %v1777_v43 = vld [vmem:[%s3298_s1 + $0xa] sm:$0x3] }
0x1d6a   :  { %vm1778_vm15 = vcmp.gt.f32.partialorder %v1777_v43, 0.5 }
0x1d6b   :  { %2777 = vtanh.f32 %v1440_v45  ;;  %v1455_v1 = vsel %vm1453_vm10, %v1440_v45, %v1345_v42  ;;  %v1779_v44 = vsel %vm1778_vm15, 1, %v2846_v17 }
0x1d75   :  { %v2778_v46 = vpop.eup %2777 }
0x1d76   :  { %1443 = vrot.lane.b32.xlu0 %v2778_v46, %s2847_s28 }
0x1de8   :  { %v1444_v48 = vpop.permute.xlu0 %1443 }
0x1de9   :  { %v1446_v49 = vmul.f32 %v2776_v39, %v1444_v48  ;;  %v1676_v39 = vld [vmem:[#allocation3 + $0xa] sm:$0x3] }
0x1deb   :  { %v1454_v50 = vsel %vm1453_vm10, %v1446_v49, %v1344_v25 }
0x1dec   :  { %1458 = vrot.lane.b32.xlu1 %v1454_v50, %s2848_s29 }
0x1e5e   :  { %v1459_v51 = vpop.permute.xlu1 %1458 }
0x1e5f   :  { %2489 = vmatmul.mubr.msk.f32.vlgmr.msra.gmra.mrb[12].mxu1 %vm43_vm0, %v1459_v51 }
0x1e60   :  { %2653 = vmatpush3.bf16.msra.mxu1 %v3103_v31  ;;  %2510 = vmatprep.mubr.msk.f32.mxu1 %vm2844_vm1, %v2845_v11 }
0x1e61   :  { %2654 = vmatprep.subr.bf16.mxu1 %v2843_v6 }
0x1e64   :  { %2656 = vmatpush3.bf16.msra.mxu1 %v3109_v34 }
0x1e65   :  { %2663 = vmatprep.subr.bf16.mxu1 %v2843_v6 }
0x1f32   :  { %v1528_v53 = vpop.f32.mrb[12].mxu1 }
0x1f33   :  { %v1532_v54 = vadd.f32 %v1528_v53, %v1456_v52  ;;  %v2490_v55 = vpop.f32.mrb[13].mxu1 }
0x1f35   :  { %2779 = vtanh.f32 %v1532_v54  ;;  %v2223_v59 = vmul.f32 -1.442695, %v1532_v54 }
0x1f37   :  { %2781 = vpow2.f32 %v2223_v59 }
0x1f3f   :  { %v2780_v57 = vpop.eup %2779 }
0x1f40   :  { %1542 = vrot.lane.b32.xlu0 %v2780_v57, %s2847_s28 }
0x1f41   :  { %v2782_v60 = vpop.eup %2781 }
0x1f42   :  { %v1536_v61 = vadd.f32 1.0, %v2782_v60  ;;  %v1786_v60 = vld [vmem:[#allocation3 + $0xc] sm:$0x3] }
0x1f44   :  { %1561 = vperm.xlu0 %2690, %v1559_v58   ;;  %2783 = vrcp.f32 %v1536_v61 }
0x1f4e   :  { %v2784_v62 = vpop.eup %2783 }
0x1f4f   :  { %v1540_v2 = vmul.f32 %v2784_v62, %v1455_v1 }
0x1fb2   :  { %v1543_v63 = vpop.permute.xlu0 %1542 }
0x1fb3   :  { %v1545_v0 = vmul.f32 %v2784_v62, %v1543_v63 }
0x1fb5   :  { %1547 = vrot.lane.b32.xlu1 %v1545_v0, %s2848_s29  ;;  %v1887_v0 = vld [vmem:[%s3298_s1 + $0xc] sm:$0x3] }
0x1fb6   :  { %vm1888_vm3 = vcmp.gt.f32.partialorder %v1887_v0, 0.5 }
0x1fc3   :  { %v1562_v7 = vpop.permute.xlu0 %1561 }
0x1fc4   :  { %vm1563_vm12 = vcmp.eq.s32.totalorder %v1562_v7, 1 }
0x2027   :  { %v1548_v3 = vpop.permute.xlu1 %1547 }
0x2028   :  { %v1550_v4 = vadd.f32 %v1548_v3, %v1540_v2  ;;  %v1889_v2 = vsel %vm1888_vm3, 1, %v2846_v17 }
0x202a   :  { %2785 = vtanh.f32 %v1550_v4  ;;  %v1565_v27 = vsel %vm1563_vm12, %v1550_v4, %v1455_v1 }
0x2034   :  { %v2786_v5 = vpop.eup %2785 }
0x2035   :  { %1553 = vrot.lane.b32.xlu1 %v2786_v5, %s2847_s28 }
0x20a7   :  { %v1554_v8 = vpop.permute.xlu1 %1553 }
0x20a8   :  { %v1556_v9 = vmul.f32 %v2784_v62, %v1554_v8 }
0x20aa   :  { %v1564_v10 = vsel %vm1563_vm12, %v1556_v9, %v1454_v50 }
0x20ab   :  { %1568 = vrot.lane.b32.xlu0 %v1564_v10, %s2848_s29 }
0x211d   :  { %v1569_v13 = vpop.permute.xlu0 %1568 }
0x211e   :  { %2500 = vmatmul.mubr.msk.f32.vlgmr.msra.gmra.mrb[14].mxu0 %vm43_vm0, %v1569_v13 }
0x211f   :  { %2659 = vmatpush3.bf16.msra.mxu0 %v3103_v31  ;;  %2521 = vmatprep.mubr.msk.f32.mxu0 %vm2844_vm1, %v2845_v11 }
0x2120   :  { %2660 = vmatprep.subr.bf16.mxu0 %v2843_v6 }
0x2123   :  { %2662 = vmatpush3.bf16.msra.mxu0 %v3109_v34 }
0x2124   :  { %2669 = vmatprep.subr.bf16.mxu0 %v2843_v6 }
0x21f1   :  { %v1638_v16 = vpop.f32.mrb[14].mxu0 }
0x21f2   :  { %v1642_v18 = vadd.f32 %v1638_v16, %v1566_v15  ;;  %v2501_v19 = vpop.f32.mrb[15].mxu0 }
0x21f4   :  { %2787 = vtanh.f32 %v1642_v18  ;;  %v2225_v12 = vmul.f32 -1.442695, %v1642_v18 }
0x21f6   :  { %2789 = vpow2.f32 %v2225_v12 }
0x21fe   :  { %v2788_v21 = vpop.eup %2787 }
0x21ff   :  { %1652 = vrot.lane.b32.xlu1 %v2788_v21, %s2847_s28 }
0x2200   :  { %v2790_v23 = vpop.eup %2789 }
0x2201   :  { %v1646_v24 = vadd.f32 1.0, %v2790_v23  ;;  %v1896_v23 = vld [vmem:[#allocation3 + $0xe] sm:$0x3] }
0x2203   :  { %1671 = vperm.xlu1 %2689, %v1669_v22   ;;  %2791 = vrcp.f32 %v1646_v24 }
0x220d   :  { %v2792_v14 = vpop.eup %2791 }
0x220e   :  { %v1650_v28 = vmul.f32 %v2792_v14, %v1565_v27 }
0x2271   :  { %v1653_v25 = vpop.permute.xlu1 %1652 }
0x2272   :  { %v1655_v26 = vmul.f32 %v2792_v14, %v1653_v25 }
0x2274   :  { %1657 = vrot.lane.b32.xlu0 %v1655_v26, %s2848_s29  ;;  %v1997_v26 = vld [vmem:[%s3298_s1 + $0xe] sm:$0x3] }
0x2275   :  { %vm1998_vm4 = vcmp.gt.f32.partialorder %v1997_v26, 0.5 }
0x2282   :  { %v1672_v33 = vpop.permute.xlu1 %1671 }
0x2283   :  { %vm1673_vm14 = vcmp.eq.s32.totalorder %v1672_v33, 1 }
0x22e6   :  { %v1658_v29 = vpop.permute.xlu0 %1657 }
0x22e7   :  { %v1660_v30 = vadd.f32 %v1658_v29, %v1650_v28  ;;  %v1999_v28 = vsel %vm1998_vm4, 1, %v2846_v17  ;;  %v2012_v17 = vld [vmem:[%s3303_s6 + $0x10] sm:$0xff] }
0x22e9   :  { %2793 = vtanh.f32 %v1660_v30  ;;  %v1675_v50 = vsel %vm1673_vm14, %v1660_v30, %v1565_v27 }
0x22f3   :  { %v2794_v32 = vpop.eup %2793 }
0x22f4   :  { %1663 = vrot.lane.b32.xlu0 %v2794_v32, %s2847_s28 }
0x2366   :  { %v1664_v35 = vpop.permute.xlu0 %1663 }
0x2367   :  { %v1666_v36 = vmul.f32 %v2792_v14, %v1664_v35 }
0x2369   :  { %v1674_v37 = vsel %vm1673_vm14, %v1666_v36, %v1564_v10  ;;  %v2010_v36 = vld [vmem:[%s3303_s6] sm:$0xff] }
0x236a   :  { %1678 = vrot.lane.b32.xlu1 %v1674_v37, %s2848_s29 }
0x23dc   :  { %v1679_v38 = vpop.permute.xlu1 %1678 }
0x23dd   :  { %2511 = vmatmul.mubr.msk.f32.vlgmr.msra.gmra.mrb[14].mxu1 %vm43_vm0, %v1679_v38 }
0x23de   :  { %2665 = vmatpush3.bf16.msra.mxu1 %v3103_v31  ;;  %2532 = vmatprep.mubr.msk.f32.mxu1 %vm2844_vm1, %v2845_v11 }
0x23df   :  { %2666 = vmatprep.subr.bf16.mxu1 %v2843_v6 }
0x23e2   :  { %2668 = vmatpush3.bf16.msra.mxu1 %v3109_v34 }
0x23e3   :  { %2675 = vmatprep.subr.bf16.mxu1 %v2843_v6 }
0x24b0   :  { %v1748_v40 = vpop.f32.mrb[14].mxu1 }
0x24b1   :  { %v1752_v41 = vadd.f32 %v1748_v40, %v1676_v39  ;;  %v2512_v42 = vpop.f32.mrb[15].mxu1  ;;  %v2013_v39 = vld [vmem:[%s3303_s6 + $0x18] sm:$0xff] }
0x24b2   :  { %v2673_v40 = vpack.c.bf16 %v2013_v39, %v2012_v17 }
0x24b3   :  { %2795 = vtanh.f32 %v1752_v41  ;;  %v2227_v45 = vmul.f32 -1.442695, %v1752_v41 }
0x24b5   :  { %2797 = vpow2.f32 %v2227_v45 }
0x24bd   :  { %v2796_v31 = vpop.eup %2795 }
0x24be   :  { %1762 = vrot.lane.b32.xlu0 %v2796_v31, %s2847_s28 }
0x24bf   :  { %v2798_v34 = vpop.eup %2797 }
0x24c0   :  { %v1756_v46 = vadd.f32 1.0, %v2798_v34  ;;  %v2006_v34 = vld [vmem:[%s3302_s5] sm:$0xff] }
0x24c2   :  { %1781 = vperm.xlu0 %2690, %v1779_v44   ;;  %2799 = vrcp.f32 %v1756_v46  ;;  %v2007_v46 = vld [vmem:[%s3302_s5 + $0x8] sm:$0xff] }
0x24cc   :  { %v2800_v47 = vpop.eup %2799 }
0x24cd   :  { %v1760_v51 = vmul.f32 %v2800_v47, %v1675_v50 }
0x2530   :  { %v1763_v48 = vpop.permute.xlu0 %1762 }
0x2531   :  { %v1765_v49 = vmul.f32 %v2800_v47, %v1763_v48  ;;  %v2676_v48 = vpack.c.bf16 %v2007_v46, %v2006_v34 }
0x2533   :  { %1767 = vrot.lane.b32.xlu1 %v1765_v49, %s2848_s29  ;;  %v2009_v49 = vld [vmem:[%s3302_s5 + $0x18] sm:$0xff] }
0x2541   :  { %v1782_v55 = vpop.permute.xlu0 %1781 }
0x2542   :  { %vm1783_vm2 = vcmp.eq.s32.totalorder %v1782_v55, 1 }
0x25a5   :  { %v1768_v52 = vpop.permute.xlu1 %1767 }
0x25a6   :  { %v1770_v53 = vadd.f32 %v1768_v52, %v1760_v51 }
0x25a8   :  { %2801 = vtanh.f32 %v1770_v53  ;;  %v1785_v10 = vsel %vm1783_vm2, %v1770_v53, %v1675_v50 }
0x25b2   :  { %v2802_v54 = vpop.eup %2801 }
0x25b3   :  { %1773 = vrot.lane.b32.xlu1 %v2802_v54, %s2847_s28 }
0x2625   :  { %v1774_v56 = vpop.permute.xlu1 %1773 }
0x2626   :  { %v1776_v57 = vmul.f32 %v2800_v47, %v1774_v56  ;;  %v2008_v47 = vld [vmem:[%s3302_s5 + $0x10] sm:$0xff] }
0x2627   :  { %v2679_v50 = vpack.c.bf16 %v2009_v49, %v2008_v47 }
0x2628   :  { %v1784_v58 = vsel %vm1783_vm2, %v1776_v57, %v1674_v37  ;;  %v2011_v37 = vld [vmem:[%s3303_s6 + $0x8] sm:$0xff] }
0x2629   :  { %1788 = vrot.lane.b32.xlu0 %v1784_v58, %s2848_s29  ;;  %v2670_v38 = vpack.c.bf16 %v2011_v37, %v2010_v36 }
0x269b   :  { %v1789_v59 = vpop.permute.xlu0 %1788 }
0x269c   :  { %2522 = vmatmul.mubr.msk.f32.vlgmr.msra.gmra.mrb[16].mxu0 %vm43_vm0, %v1789_v59 }
0x269d   :  { %2543 = vmatprep.mubr.msk.f32.mxu0 %vm2844_vm1, %v2845_v11  ;;  %2671 = vmatpush3.bf16.msra.mxu0 %v2670_v38 }
0x269e   :  { %2672 = vmatprep.subr.bf16.mxu0 %v2843_v6 }
0x26a1   :  { %2674 = vmatpush3.bf16.msra.mxu0 %v2673_v40 }
0x276f   :  { %v1858_v61 = vpop.f32.mrb[16].mxu0 }
0x2770   :  { %v1862_v62 = vadd.f32 %v1858_v61, %v1786_v60  ;;  %v2523_v63 = vpop.f32.mrb[17].mxu0 }
0x2772   :  { %2803 = vtanh.f32 %v1862_v62  ;;  %v2229_v3 = vmul.f32 -1.442695, %v1862_v62 }
0x2774   :  { %2805 = vpow2.f32 %v2229_v3 }
0x277c   :  { %v2804_v1 = vpop.eup %2803 }
0x277d   :  { %1872 = vrot.lane.b32.xlu1 %v2804_v1, %s2847_s28 }
0x277e   :  { %v2806_v4 = vpop.eup %2805 }
0x277f   :  { %v1866_v5 = vadd.f32 1.0, %v2806_v4 }
0x2781   :  { %1891 = vperm.xlu1 %2689, %v1889_v2   ;;  %2807 = vrcp.f32 %v1866_v5 }
0x278b   :  { %v2808_v7 = vpop.eup %2807 }
0x278c   :  { %v1870_v13 = vmul.f32 %v2808_v7, %v1785_v10 }
0x27ef   :  { %v1873_v8 = vpop.permute.xlu1 %1872 }
0x27f0   :  { %v1875_v9 = vmul.f32 %v2808_v7, %v1873_v8 }
0x27f2   :  { %1877 = vrot.lane.b32.xlu0 %v1875_v9, %s2848_s29 }
0x2800   :  { %v1892_v19 = vpop.permute.xlu1 %1891 }
0x2801   :  { %vm1893_vm5 = vcmp.eq.s32.totalorder %v1892_v19, 1 }
0x2864   :  { %v1878_v15 = vpop.permute.xlu0 %1877 }
0x2865   :  { %v1880_v16 = vadd.f32 %v1878_v15, %v1870_v13 }
0x2867   :  { %2809 = vtanh.f32 %v1880_v16  ;;  %v1895_v41 = vsel %vm1893_vm5, %v1880_v16, %v1785_v10 }
0x2871   :  { %v2810_v18 = vpop.eup %2809 }
0x2872   :  { %1883 = vrot.lane.b32.xlu0 %v2810_v18, %s2847_s28 }
0x28e4   :  { %v1884_v20 = vpop.permute.xlu0 %1883 }
0x28e5   :  { %v1886_v21 = vmul.f32 %v2808_v7, %v1884_v20 }
0x28e7   :  { %v1894_v22 = vsel %vm1893_vm5, %v1886_v21, %v1784_v58 }
0x28e8   :  { %1898 = vrot.lane.b32.xlu1 %v1894_v22, %s2848_s29 }
0x295a   :  { %v1899_v12 = vpop.permute.xlu1 %1898 }
0x295b   :  { %2533 = vmatmul.mubr.msk.f32.vlgmr.msra.gmra.mrb[16].mxu1 %vm43_vm0, %v1899_v12 }
0x295c   :  { %2554 = vmatprep.mubr.msk.f32.mxu1 %vm2844_vm1, %v2845_v11  ;;  %2677 = vmatpush3.bf16.msra.mxu1 %v2676_v48 }
0x295d   :  { %2678 = vmatprep.subr.bf16.mxu1 %v2843_v6  ;;  %v2234_v6 = vld [vmem:[%s3304_s7] ss:$0 sm:$0xff] }
0x2960   :  { %2680 = vmatpush3.bf16.msra.mxu1 %v2679_v50 }
0x2a2e   :  { %v1968_v24 = vpop.f32.mrb[16].mxu1 }
0x2a2f   :  { %v1972_v14 = vadd.f32 %v1968_v24, %v1896_v23  ;;  %v2534_v25 = vpop.f32.mrb[17].mxu1 }
0x2a31   :  { %2811 = vtanh.f32 %v1972_v14  ;;  %v2231_v29 = vmul.f32 -1.442695, %v1972_v14 }
0x2a33   :  { %2813 = vpow2.f32 %v2231_v29 }
0x2a3b   :  { %v2812_v27 = vpop.eup %2811 }
0x2a3c   :  { %1982 = vrot.lane.b32.xlu0 %v2812_v27, %s2847_s28 }
0x2a3d   :  { %v2814_v30 = vpop.eup %2813 }
0x2a3e   :  { %v1976_v11 = vadd.f32 1.0, %v2814_v30 }
0x2a40   :  { %2001 = vperm.xlu0 %2690, %v1999_v28   ;;  %2815 = vrcp.f32 %v1976_v11 }
0x2a4a   :  { %v2816_v32 = vpop.eup %2815 }
0x2a4b   :  { %v1980_v43 = vmul.f32 %v2816_v32, %v1895_v41 }
0x2aae   :  { %v1983_v33 = vpop.permute.xlu0 %1982 }
0x2aaf   :  { %v1985_v35 = vmul.f32 %v2816_v32, %v1983_v33 }
0x2ab1   :  { %1987 = vrot.lane.b32.xlu1 %v1985_v35, %s2848_s29 }
0x2abf   :  { %v2002_v42 = vpop.permute.xlu0 %2001 }
0x2ac0   :  { %vm2003_vm1 = vcmp.eq.s32.totalorder %v2002_v42, 1 }
0x2b23   :  { %v1988_v31 = vpop.permute.xlu1 %1987 }
0x2b24   :  { %v1990_v44 = vadd.f32 %v1988_v31, %v1980_v43 }
0x2b26   :  { %2817 = vtanh.f32 %v1990_v44  ;;  %v2005_v45 = vsel %vm2003_vm1, %v1990_v44, %v1895_v41 }
0x2b27   :  { %2015 = vrot.lane.b32.xlu0 %v2005_v45, %s2849_s16 }
0x2b30   :  { %v2818_v51 = vpop.eup %2817 }
0x2b31   :  { %1993 = vrot.lane.b32.xlu1 %v2818_v51, %s2847_s28  ;;  %s2850_s28 = smov [#allocation4]  }
0x2b32   :  { %s2179_s24 = sshll.u32 %s2850_s28, 4  ;;  %s2180_s24 = int_to_ptr.vmem [resolvable:$true] %s2179_s24 }
0x2b33   :  { %s2819_s0 = scalar_lea.vmem %s2180_s24, 32  ;;  %p2824_p1 = scmp.lt.s32.totalorder %s2180_s24, %s2180_s24 }
0x2b34   :  { %p2820_p0 = scmp.ne.s32.totalorder %s2180_s24, %s2819_s0  ;;  %p2825_p2 = scmp.lt.s32.totalorder %s2819_s0, %s2819_s0 }
0x2b36   :  { %p2826_p3 = por %p2825_p2, %p2824_p1 }
0x2b38   :  { %p2827_p4 = pnand %p2826_p3, %p2820_p0 }
0x2b99   :  { %v2016_v52 = vpop.permute.xlu0 %2015 }
0x2b9a   :  { %2544 = vmatmul.mubr.msk.f32.vlgmr.msra.gmra.mrb[18].mxu0 %vm43_vm0, %v2016_v52 }
0x2ba3   :  { %v1994_v53 = vpop.permute.xlu1 %1993 }
0x2ba4   :  { %v1996_v54 = vmul.f32 %v2816_v32, %v1994_v53 }
0x2ba6   :  { %v2004_v55 = vsel %vm2003_vm1, %v1996_v54, %v1894_v22 }
0x2ba7   :  { %2090 = vrot.lane.b32.xlu1 %v2004_v55, %s2848_s29 }
0x2c19   :  { %v2091_v56 = vpop.permute.xlu1 %2090 }
0x2c1a   :  { %2555 = vmatmul.mubr.msk.f32.vlgmr.msra.gmra.mrb[18].mxu1 %vm43_vm0, %v2091_v56 }
0x2c6d   :  { %v2085_v57 = vpop.f32.mrb[18].mxu0 }
0x2c6e   :  { %v2545_v58 = vpop.f32.mrb[19].mxu0 }
0x2ced   :  { %v2160_v59 = vpop.f32.mrb[18].mxu1 }
0x2cee   :  { %v2161_v60 = vadd.f32 %v2160_v59, %v2085_v57  ;;  %v2556_v61 = vpop.f32.mrb[19].mxu1 }
0x2cf0   :  { %v2171_v62 = vadd.f32 %v2234_v6, %v2161_v60 }
0x2cf2   :  { %2172 = vst [vmem:[#allocation4] sm:$0x3] %v2171_v62 }
0x2cf3   :  { %2830 = shalt.err (!%p2827_p4)
}
0x2cf4   :  { %s2831_s26 = scalar_lea.hbm %s3305_s8, 32 }
0x2cf5   :  { %p2832_p5 = scmp.ne.s32.totalorder %s3305_s8, %s2831_s26  ;;  %p2835_p6 = scmp.lt.u32.totalorder %s2831_s26, %s3305_s8 }
0x2cf7   :  { %p2837_p7 = pnand %p2835_p6, %p2832_p5 }
0x2cf9   :  { %2840 = shalt.err (!%p2837_p7)
}
0x2cfa   :  { %2182 = dma.vmem_to_hbm [thread:$0]  %s2180_s24, 32, %s3305_s8, [#allocation5]  }
0x2cfb   :  { %2841 = dma.done.wait [#allocation5], 32  }
0x2cfc   :  { %2842 = vsyncadd [#allocation5], 4294967264 }
0x2cfd   :  { %2186 = vsyncpa [#allocation5], 1 }

</bundles_post_ra>
